<compile_context>
chip_gen: v7x
topology: tpu7x:2x2x1
jax: 0.10.0
libtpu: 0.0.40
codegen_flags: <defaults>
</compile_context>

<pallas_src>
import jax
import jax.numpy as jnp
from jax.experimental import pallas as pl
from jax.experimental.pallas import tpu as pltpu


# ---------------------------------------------------------------------------
# Fused kernel: f_node -> f_edge(folded) -> edge2node -> f_edge2node
#               -> f_node2edge (folded, /m folded, VPU-reduce last layer)
# One grid step processes `tb` full batch elements (tb*m node rows).
# ---------------------------------------------------------------------------
def _make_kernel(tb, m, d, L, mxu_dtype, dense_x):
    rows = tb * m

    def kernel(x_ref,
               w1n, b1n, w2n, b2n,        # f_node
               w1e, b1e, w2e, b2e,        # f_edge       (W1 concat-folded)
               w1en, b1en, w2en, b2en,    # f_edge2node
               w1ne, b1ne, w2ne, b2ne,    # f_node2edge  (W1 folded, /m folded)
               x_out_ref, he_out_ref):

        def mm(z, w_ref):                 # MXU matmul, f32 accumulation
            return jnp.dot(z.astype(mxu_dtype), w_ref[...],
                           preferred_element_type=jnp.float32)

        def mlp(z, w1, b1, w2, b2):       # bias + ReLU stay in f32 on the VPU
            h = jnp.maximum(mm(z, w1) + b1[...], 0.0)
            return mm(h, w2) + b2[...]

        # NOTE: these reshapes only merge/split *leading* dims (last dim kept),
        # relayout-free when m % 8 == 0 (true for the intended node counts).
        x2d = x_ref[...].reshape(rows, d)

        x1 = mlp(x2d, w1n, b1n, w2n, b2n)                        # (rows, L)
        g = mlp(x1, w1e, b1e, w2e, b2e).reshape(tb, m, L)        # (tb, m, L)
        # edge2node[b, j] = sum_{i != j} g[b, i] = (sum over i) - g[b, j]
        e2n = jnp.sum(g, axis=1, keepdims=True) - g              # (tb, m, L)
        x2 = mlp(e2n.reshape(rows, L), w1en, b1en, w2en, b2en)   # (rows, L)

        # f_node2edge: hidden layer on the MXU, last (L -> 1) layer as a VPU
        # multiply + lane reduce (1/m already folded into w2ne / b2ne).
        h_ne = jnp.maximum(mm(x2, w1ne) + b1ne[...], 0.0)        # (rows, L)
        he = jnp.sum(h_ne.reshape(tb, m, L) * w2ne[...], axis=-1) + b2ne[...]  # (tb, m)

        if dense_x:
            # Lane-dense (tb, m*L) slab -> unmasked stores.
            x_out_ref[...] = x2.reshape(x_out_ref.shape).astype(x_out_ref.dtype)
        else:
            x_out_ref[...] = x2.reshape(tb, m, L).astype(x_out_ref.dtype)
        he_out_ref[...] = he.astype(he_out_ref.dtype)

    return kernel


def _build_call(Np, m, d, L, tb, weights, out_dtype, mxu_dtype, dense_x, single_buf_w):
    kernel = _make_kernel(tb, m, d, L, mxu_dtype, dense_x)

    def w_spec(a):
        # Weight/bias blocks never change across grid steps.
        if single_buf_w:
            return pl.BlockSpec(a.shape, lambda n: (0,) * a.ndim,
                                pipeline_mode=pl.Buffered(1))
        return pl.BlockSpec(a.shape, lambda n: (0,) * a.ndim)

    if dense_x:
        x_shape = jax.ShapeDtypeStruct((Np, m * L), out_dtype)
        x_spec = pl.BlockSpec((tb, m * L), lambda n: (n, 0))
    else:
        x_shape = jax.ShapeDtypeStruct((Np, m, L), out_dtype)
        x_spec = pl.BlockSpec((tb, m, L), lambda n: (n, 0, 0))

    return pl.pallas_call(
        kernel,
        out_shape=(x_shape, jax.ShapeDtypeStruct((Np, m), out_dtype)),
        grid=(Np // tb,),
        in_specs=[pl.BlockSpec((tb, m, d), lambda n: (n, 0, 0))]
                 + [w_spec(a) for a in weights],
        out_specs=(x_spec, pl.BlockSpec((tb, m), lambda n: (n, 0))),
        compiler_params=pltpu.CompilerParams(dimension_semantics=("parallel",)),
    )


def _tensorcores_per_chip():
    """Best-effort TensorCore count visible to one Pallas program."""
    try:
        kind = jax.devices()[0].device_kind.lower()
    except Exception:
        return 1
    if "lite" in kind or "v5e" in kind or "v6e" in kind:
        return 1                             # single TensorCore per chip
    if "v7" in kind or "v4" in kind or "v5p" in kind or "v5" in kind:
        return 2                             # megacore / dual-TC chips
    return 1


def _pick_batch_tile(N, m, ncores):
    # ~4096 node rows of work per grid step amortizes the ~0.35us/step cost.
    tb = max(1, min(N, 4096 // max(m, 1)))
    if ncores >= 2 and N >= 2:
        tb = min(tb, -(-N // ncores))        # give every TensorCore a slice
    if tb >= N:
        return N, 0
    # For grid > 1 the (tb, m) / (tb, m*L) output blocks need tb % 8 == 0.
    tb = (tb // 8) * 8
    if tb <= 0:
        return N, 0
    # Prefer a tb that divides N -> removes the pad + output-slice HBM copies.
    c = tb
    while c >= 8 and c * 4 >= tb:
        if N % c == 0:
            return c, 0
        c -= 8
    return tb, (-N) % tb


# ---------------------------------------------------------------------------
# Wrapper
# ---------------------------------------------------------------------------
def encoder_nri_forward(x, params, *, mxu_dtype=jnp.float32):
    """x: (N, m, d) -> (x_out (N, m, L), edge (N, m, m)).

    Pass mxu_dtype=jnp.bfloat16 on v6e/v7x to halve streamed HBM bytes and
    double MXU rate; accumulation and elementwise math stay f32 (v5e-safe)."""
    N, m, d = x.shape
    L = params["f_node"][2].shape[1]
    out_dtype = x.dtype
    f32 = jnp.float32

    def fold_concat(w1):
        # exact: concat(z, z) @ W1 == z @ (W1[:half] + W1[half:])
        half = w1.shape[0] // 2
        return w1[:half] + w1[half:]

    w1n, b1n, w2n, b2n = params["f_node"]
    w1e, b1e, w2e, b2e = params["f_edge"]
    w1en, b1en, w2en, b2en = params["f_edge2node"]
    w1ne, b1ne, w2ne, b2ne = params["f_node2edge"]
    w1e, w1ne = fold_concat(w1e), fold_concat(w1ne)
    w2ne, b2ne = w2ne / m, b2ne / m          # fold the `edge /= m` (exact)

    weights = [
        w1n.astype(mxu_dtype), b1n.reshape(1, -1).astype(f32),
        w2n.astype(mxu_dtype), b2n.reshape(1, -1).astype(f32),
        w1e.astype(mxu_dtype), b1e.reshape(1, -1).astype(f32),
        w2e.astype(mxu_dtype), b2e.reshape(1, -1).astype(f32),
        w1en.astype(mxu_dtype), b1en.reshape(1, -1).astype(f32),
        w2en.astype(mxu_dtype), b2en.reshape(1, -1).astype(f32),
        w1ne.astype(mxu_dtype), b1ne.reshape(1, -1).astype(f32),
        w2ne.reshape(1, 1, -1).astype(f32),  # VPU-reduce weights (lane layout)
        b2ne.reshape(1, 1).astype(f32),
    ]

    tb, pad = _pick_batch_tile(N, m, _tensorcores_per_chip())
    xp = jnp.pad(x, ((0, pad), (0, 0), (0, 0))) if pad else x
    xp = xp.astype(mxu_dtype)
    Np = N + pad

    # Attempt order: lane-dense x output and single-buffered weights first,
    # falling back to more conservative configs if Mosaic rejects one.
    attempts = []
    if (m * L) % 128 == 0:
        attempts += [(True, True), (True, False)]
    attempts += [(False, True), (False, False)]

    x_out = he_out = None
    dense_used = False
    for idx, (dense_x, sbuf) in enumerate(attempts):
        try:
            call = _build_call(Np, m, d, L, tb, weights, out_dtype,
                               mxu_dtype, dense_x, sbuf)
            x_out, he_out = call(xp, *weights)
            dense_used = dense_x
            break
        except Exception:
            if idx == len(attempts) - 1:
                raise

    if pad:
        x_out, he_out = x_out[:N], he_out[:N]
    x_res = x_out.reshape(N, m, L) if dense_used else x_out
    # edge[n, i, j] is independent of j (construct_pair's double transpose):
    # broadcast OUTSIDE the kernel instead of materializing (N, m, m) in VMEM.
    edge = jnp.broadcast_to(he_out[:, :, None], (N, m, m))
    return x_res, edge


# ---------------------------------------------------------------------------
# Parameter init (utils.init_network_weights: W ~ N(0, 0.1), b = 0)
# ---------------------------------------------------------------------------
def init_ff(key, dim_in, dim_hid, dim_out):
    k1, k2 = jax.random.split(key)
    w1 = 0.1 * jax.random.normal(k1, (dim_in, dim_hid), jnp.float32)
    b1 = jnp.zeros((dim_hid,), jnp.float32)
    w2 = 0.1 * jax.random.normal(k2, (dim_hid, dim_out), jnp.float32)
    b2 = jnp.zeros((dim_out,), jnp.float32)
    return (w1, b1, w2, b2)


def init_params(key, input_dim, latent_dim):
    k1, k2, k3, k4 = jax.random.split(key, 4)
    return {
        "f_node":      init_ff(k1, input_dim, latent_dim * 2, latent_dim),
        "f_edge":      init_ff(k2, 2 * latent_dim, latent_dim, latent_dim),
        "f_edge2node": init_ff(k3, latent_dim, latent_dim * 2, latent_dim),
        "f_node2edge": init_ff(k4, 2 * latent_dim, latent_dim, 1),
    }


# ---------------------------------------------------------------------------
# Pure-JAX reference, computed the "full" PyTorch way (pair tensors, masked
# off-diagonal reduction) to verify the algebraically-collapsed kernel.
# ---------------------------------------------------------------------------
def _ff_ref(x, p):
    w1, b1, w2, b2 = p
    return jnp.maximum(x @ w1 + b1, 0.0) @ w2 + b2


def _construct_pair_ref(x):
    # Exactly mirrors the PyTorch construct_pair (receiver transposed twice).
    N, m, d = x.shape
    sender = jnp.broadcast_to(x[:, :, None, :], (N, m, m, d))
    receiver = jnp.broadcast_to(x[:, :, None, :], (N, m, m, d))
    receiver = jnp.swapaxes(receiver, 1, 2)
    receiver = jnp.swapaxes(receiver, 1, 2)
    return jnp.concatenate([sender, receiver], axis=-1)


def _ref_forward(x, params):
    N, m, d = x.shape
    x = _ff_ref(x, params["f_node"])
    edge = _ff_ref(_construct_pair_ref(x), params["f_edge"])
    off_diag = (jnp.ones((m, m)) - jnp.eye(m)).reshape(1, m, m, 1)
    e2n = jnp.sum(edge * off_diag, axis=1)
    x = _ff_ref(e2n, params["f_edge2node"])
    edge2 = _ff_ref(_construct_pair_ref(x), params["f_node2edge"]) / m
    return x, edge2[..., 0]


if __name__ == "__main__":
    N, m, d, latent = 2, 8, 4, 32
    x = jax.random.normal(jax.random.PRNGKey(0), (N, m, d), jnp.float32)
    params = init_params(jax.random.PRNGKey(1), d, latent)

    out_x, out_edge = encoder_nri_forward(x, params)
    jax.block_until_ready((out_x, out_edge))

    ref_x, ref_edge = _ref_forward(x, params)
    assert out_x.shape == (N, m, latent) and out_edge.shape == (N, m, m)
    assert jnp.allclose(out_x, ref_x, rtol=1e-4, atol=1e-4)
    assert jnp.allclose(out_edge, ref_edge, rtol=1e-4, atol=1e-4)

    print("KERNEL_OK")
</pallas_src>

<mosaic_0001>
module attributes {stable_mosaic.version = 11 : i64} {
  func.func @kernel(%arg0: i32, %arg1: memref<2x8x4xf32, #tpu.memory_space<vmem>>, %arg2: memref<4x64xf32, #tpu.memory_space<vmem>>, %arg3: memref<1x64xf32, #tpu.memory_space<vmem>>, %arg4: memref<64x32xf32, #tpu.memory_space<vmem>>, %arg5: memref<1x32xf32, #tpu.memory_space<vmem>>, %arg6: memref<32x32xf32, #tpu.memory_space<vmem>>, %arg7: memref<1x32xf32, #tpu.memory_space<vmem>>, %arg8: memref<32x32xf32, #tpu.memory_space<vmem>>, %arg9: memref<1x32xf32, #tpu.memory_space<vmem>>, %arg10: memref<32x64xf32, #tpu.memory_space<vmem>>, %arg11: memref<1x64xf32, #tpu.memory_space<vmem>>, %arg12: memref<64x32xf32, #tpu.memory_space<vmem>>, %arg13: memref<1x32xf32, #tpu.memory_space<vmem>>, %arg14: memref<32x32xf32, #tpu.memory_space<vmem>>, %arg15: memref<1x32xf32, #tpu.memory_space<vmem>>, %arg16: memref<1x1x32xf32, #tpu.memory_space<vmem>>, %arg17: memref<1x1xf32, #tpu.memory_space<vmem>>, %arg18: memref<2x256xf32, #tpu.memory_space<vmem>>, %arg19: memref<2x8xf32, #tpu.memory_space<vmem>>) attributes {dimension_semantics = [#tpu.dimension_semantics<parallel>], iteration_bounds = array<i64: 1>, scalar_prefetch = 0 : i64, scratch_operands = 0 : i64, tpu.core_type = #tpu.core_type<tc>, window_params = [{transform_indices = @transform_0, window_bounds = array<i64: 2, 8, 4>}, {pipeline_mode = #tpu.pipeline_mode<synchronous>, transform_indices = @transform_1, window_bounds = array<i64: 4, 64>}, {pipeline_mode = #tpu.pipeline_mode<synchronous>, transform_indices = @transform_2, window_bounds = array<i64: 1, 64>}, {pipeline_mode = #tpu.pipeline_mode<synchronous>, transform_indices = @transform_3, window_bounds = array<i64: 64, 32>}, {pipeline_mode = #tpu.pipeline_mode<synchronous>, transform_indices = @transform_4, window_bounds = array<i64: 1, 32>}, {pipeline_mode = #tpu.pipeline_mode<synchronous>, transform_indices = @transform_5, window_bounds = array<i64: 32, 32>}, {pipeline_mode = #tpu.pipeline_mode<synchronous>, transform_indices = @transform_6, window_bounds = array<i64: 1, 32>}, {pipeline_mode = #tpu.pipeline_mode<synchronous>, transform_indices = @transform_7, window_bounds = array<i64: 32, 32>}, {pipeline_mode = #tpu.pipeline_mode<synchronous>, transform_indices = @transform_8, window_bounds = array<i64: 1, 32>}, {pipeline_mode = #tpu.pipeline_mode<synchronous>, transform_indices = @transform_9, window_bounds = array<i64: 32, 64>}, {pipeline_mode = #tpu.pipeline_mode<synchronous>, transform_indices = @transform_10, window_bounds = array<i64: 1, 64>}, {pipeline_mode = #tpu.pipeline_mode<synchronous>, transform_indices = @transform_11, window_bounds = array<i64: 64, 32>}, {pipeline_mode = #tpu.pipeline_mode<synchronous>, transform_indices = @transform_12, window_bounds = array<i64: 1, 32>}, {pipeline_mode = #tpu.pipeline_mode<synchronous>, transform_indices = @transform_13, window_bounds = array<i64: 32, 32>}, {pipeline_mode = #tpu.pipeline_mode<synchronous>, transform_indices = @transform_14, window_bounds = array<i64: 1, 32>}, {pipeline_mode = #tpu.pipeline_mode<synchronous>, transform_indices = @transform_15, window_bounds = array<i64: 1, 1, 32>}, {pipeline_mode = #tpu.pipeline_mode<synchronous>, transform_indices = @transform_16, window_bounds = array<i64: 1, 1>}, {transform_indices = @transform_17, window_bounds = array<i64: 2, 256>}, {transform_indices = @transform_18, window_bounds = array<i64: 2, 8>}]} {
    %c0 = arith.constant 0 : index
    %c0_0 = arith.constant 0 : index
    %c0_1 = arith.constant 0 : index
    %0 = vector.load %arg1[%c0, %c0_0, %c0_1] : memref<2x8x4xf32, #tpu.memory_space<vmem>>, vector<2x8x4xf32>
    %1 = vector.shape_cast %0 : vector<2x8x4xf32> to vector<16x4xf32>
    %c0_2 = arith.constant 0 : index
    %c0_3 = arith.constant 0 : index
    %2 = vector.load %arg2[%c0_2, %c0_3] : memref<4x64xf32, #tpu.memory_space<vmem>>, vector<4x64xf32>
    %cst = arith.constant dense<0.000000e+00> : vector<16x64xf32>
    %3 = tpu.matmul %1, %2, %cst {dimension_numbers = #tpu.dot_dimension_numbers<[1], [0], [0], [1], [0, 0, 1, 1], [], []>} : vector<16x4xf32>, vector<4x64xf32>, vector<16x64xf32> -> vector<16x64xf32>
    %c0_4 = arith.constant 0 : index
    %c0_5 = arith.constant 0 : index
    %4 = vector.load %arg3[%c0_4, %c0_5] : memref<1x64xf32, #tpu.memory_space<vmem>>, vector<1x64xf32>
    %5 = vector.broadcast %4 : vector<1x64xf32> to vector<16x64xf32>
    %6 = arith.addf %3, %5 : vector<16x64xf32>
    %cst_6 = arith.constant 0.000000e+00 : f32
    %7 = vector.broadcast %cst_6 : f32 to vector<16x64xf32>
    %8 = arith.maximumf %6, %7 : vector<16x64xf32>
    %c0_7 = arith.constant 0 : index
    %c0_8 = arith.constant 0 : index
    %9 = vector.load %arg4[%c0_7, %c0_8] : memref<64x32xf32, #tpu.memory_space<vmem>>, vector<64x32xf32>
    %cst_9 = arith.constant dense<0.000000e+00> : vector<16x32xf32>
    %10 = tpu.matmul %8, %9, %cst_9 {dimension_numbers = #tpu.dot_dimension_numbers<[1], [0], [0], [1], [0, 0, 1, 1], [], []>} : vector<16x64xf32>, vector<64x32xf32>, vector<16x32xf32> -> vector<16x32xf32>
    %c0_10 = arith.constant 0 : index
    %c0_11 = arith.constant 0 : index
    %11 = vector.load %arg5[%c0_10, %c0_11] : memref<1x32xf32, #tpu.memory_space<vmem>>, vector<1x32xf32>
    %12 = vector.broadcast %11 : vector<1x32xf32> to vector<16x32xf32>
    %13 = arith.addf %10, %12 : vector<16x32xf32>
    %c0_12 = arith.constant 0 : index
    %c0_13 = arith.constant 0 : index
    %14 = vector.load %arg6[%c0_12, %c0_13] : memref<32x32xf32, #tpu.memory_space<vmem>>, vector<32x32xf32>
    %cst_14 = arith.constant dense<0.000000e+00> : vector<16x32xf32>
    %15 = tpu.matmul %13, %14, %cst_14 {dimension_numbers = #tpu.dot_dimension_numbers<[1], [0], [0], [1], [0, 0, 1, 1], [], []>} : vector<16x32xf32>, vector<32x32xf32>, vector<16x32xf32> -> vector<16x32xf32>
    %c0_15 = arith.constant 0 : index
    %c0_16 = arith.constant 0 : index
    %16 = vector.load %arg7[%c0_15, %c0_16] : memref<1x32xf32, #tpu.memory_space<vmem>>, vector<1x32xf32>
    %17 = vector.broadcast %16 : vector<1x32xf32> to vector<16x32xf32>
    %18 = arith.addf %15, %17 : vector<16x32xf32>
    %cst_17 = arith.constant 0.000000e+00 : f32
    %19 = vector.broadcast %cst_17 : f32 to vector<16x32xf32>
    %20 = arith.maximumf %18, %19 : vector<16x32xf32>
    %c0_18 = arith.constant 0 : index
    %c0_19 = arith.constant 0 : index
    %21 = vector.load %arg8[%c0_18, %c0_19] : memref<32x32xf32, #tpu.memory_space<vmem>>, vector<32x32xf32>
    %cst_20 = arith.constant dense<0.000000e+00> : vector<16x32xf32>
    %22 = tpu.matmul %20, %21, %cst_20 {dimension_numbers = #tpu.dot_dimension_numbers<[1], [0], [0], [1], [0, 0, 1, 1], [], []>} : vector<16x32xf32>, vector<32x32xf32>, vector<16x32xf32> -> vector<16x32xf32>
    %c0_21 = arith.constant 0 : index
    %c0_22 = arith.constant 0 : index
    %23 = vector.load %arg9[%c0_21, %c0_22] : memref<1x32xf32, #tpu.memory_space<vmem>>, vector<1x32xf32>
    %24 = vector.broadcast %23 : vector<1x32xf32> to vector<16x32xf32>
    %25 = arith.addf %22, %24 : vector<16x32xf32>
    %26 = vector.shape_cast %25 : vector<16x32xf32> to vector<2x8x32xf32>
    %cst_23 = arith.constant dense<0.000000e+00> : vector<2x32xf32>
    %27 = vector.multi_reduction <add>, %26, %cst_23 [1] : vector<2x8x32xf32> to vector<2x32xf32>
    %28 = vector.shape_cast %27 : vector<2x32xf32> to vector<2x1x32xf32>
    %29 = vector.broadcast %28 : vector<2x1x32xf32> to vector<2x8x32xf32>
    %30 = arith.subf %29, %26 : vector<2x8x32xf32>
    %31 = vector.shape_cast %30 : vector<2x8x32xf32> to vector<16x32xf32>
    %c0_24 = arith.constant 0 : index
    %c0_25 = arith.constant 0 : index
    %32 = vector.load %arg10[%c0_24, %c0_25] : memref<32x64xf32, #tpu.memory_space<vmem>>, vector<32x64xf32>
    %cst_26 = arith.constant dense<0.000000e+00> : vector<16x64xf32>
    %33 = tpu.matmul %31, %32, %cst_26 {dimension_numbers = #tpu.dot_dimension_numbers<[1], [0], [0], [1], [0, 0, 1, 1], [], []>} : vector<16x32xf32>, vector<32x64xf32>, vector<16x64xf32> -> vector<16x64xf32>
    %c0_27 = arith.constant 0 : index
    %c0_28 = arith.constant 0 : index
    %34 = vector.load %arg11[%c0_27, %c0_28] : memref<1x64xf32, #tpu.memory_space<vmem>>, vector<1x64xf32>
    %35 = vector.broadcast %34 : vector<1x64xf32> to vector<16x64xf32>
    %36 = arith.addf %33, %35 : vector<16x64xf32>
    %cst_29 = arith.constant 0.000000e+00 : f32
    %37 = vector.broadcast %cst_29 : f32 to vector<16x64xf32>
    %38 = arith.maximumf %36, %37 : vector<16x64xf32>
    %c0_30 = arith.constant 0 : index
    %c0_31 = arith.constant 0 : index
    %39 = vector.load %arg12[%c0_30, %c0_31] : memref<64x32xf32, #tpu.memory_space<vmem>>, vector<64x32xf32>
    %cst_32 = arith.constant dense<0.000000e+00> : vector<16x32xf32>
    %40 = tpu.matmul %38, %39, %cst_32 {dimension_numbers = #tpu.dot_dimension_numbers<[1], [0], [0], [1], [0, 0, 1, 1], [], []>} : vector<16x64xf32>, vector<64x32xf32>, vector<16x32xf32> -> vector<16x32xf32>
    %c0_33 = arith.constant 0 : index
    %c0_34 = arith.constant 0 : index
    %41 = vector.load %arg13[%c0_33, %c0_34] : memref<1x32xf32, #tpu.memory_space<vmem>>, vector<1x32xf32>
    %42 = vector.broadcast %41 : vector<1x32xf32> to vector<16x32xf32>
    %43 = arith.addf %40, %42 : vector<16x32xf32>
    %c0_35 = arith.constant 0 : index
    %c0_36 = arith.constant 0 : index
    %44 = vector.load %arg14[%c0_35, %c0_36] : memref<32x32xf32, #tpu.memory_space<vmem>>, vector<32x32xf32>
    %cst_37 = arith.constant dense<0.000000e+00> : vector<16x32xf32>
    %45 = tpu.matmul %43, %44, %cst_37 {dimension_numbers = #tpu.dot_dimension_numbers<[1], [0], [0], [1], [0, 0, 1, 1], [], []>} : vector<16x32xf32>, vector<32x32xf32>, vector<16x32xf32> -> vector<16x32xf32>
    %c0_38 = arith.constant 0 : index
    %c0_39 = arith.constant 0 : index
    %46 = vector.load %arg15[%c0_38, %c0_39] : memref<1x32xf32, #tpu.memory_space<vmem>>, vector<1x32xf32>
    %47 = vector.broadcast %46 : vector<1x32xf32> to vector<16x32xf32>
    %48 = arith.addf %45, %47 : vector<16x32xf32>
    %cst_40 = arith.constant 0.000000e+00 : f32
    %49 = vector.broadcast %cst_40 : f32 to vector<16x32xf32>
    %50 = arith.maximumf %48, %49 : vector<16x32xf32>
    %51 = vector.shape_cast %50 : vector<16x32xf32> to vector<2x8x32xf32>
    %c0_41 = arith.constant 0 : index
    %c0_42 = arith.constant 0 : index
    %c0_43 = arith.constant 0 : index
    %52 = vector.load %arg16[%c0_41, %c0_42, %c0_43] : memref<1x1x32xf32, #tpu.memory_space<vmem>>, vector<1x1x32xf32>
    %53 = vector.broadcast %52 : vector<1x1x32xf32> to vector<2x8x32xf32>
    %54 = arith.mulf %51, %53 : vector<2x8x32xf32>
    %cst_44 = arith.constant dense<0.000000e+00> : vector<2x8xf32>
    %55 = vector.multi_reduction <add>, %54, %cst_44 [2] : vector<2x8x32xf32> to vector<2x8xf32>
    %c0_45 = arith.constant 0 : index
    %c0_46 = arith.constant 0 : index
    %56 = vector.load %arg17[%c0_45, %c0_46] : memref<1x1xf32, #tpu.memory_space<vmem>>, vector<1x1xf32>
    %57 = vector.broadcast %56 : vector<1x1xf32> to vector<2x8xf32>
    %58 = arith.addf %55, %57 : vector<2x8xf32>
    %59 = vector.shape_cast %43 : vector<16x32xf32> to vector<2x256xf32>
    %c0_47 = arith.constant 0 : index
    %c0_48 = arith.constant 0 : index
    %60 = vector.load %arg18[%c0_47, %c0_48] : memref<2x256xf32, #tpu.memory_space<vmem>>, vector<2x256xf32>
    tpu.vector_store %arg18[%c0_47, %c0_48], %59 {strides = array<i32>} : memref<2x256xf32, #tpu.memory_space<vmem>>, vector<2x256xf32>,
    %c0_49 = arith.constant 0 : index
    %c0_50 = arith.constant 0 : index
    %61 = vector.load %arg19[%c0_49, %c0_50] : memref<2x8xf32, #tpu.memory_space<vmem>>, vector<2x8xf32>
    tpu.vector_store %arg19[%c0_49, %c0_50], %58 {strides = array<i32>} : memref<2x8xf32, #tpu.memory_space<vmem>>, vector<2x8xf32>,
    return
  }
  func.func @transform_0(%arg0: i32) -> (i32, i32, i32) {
    %c0_i32 = arith.constant 0 : i32
    %c0_i32_0 = arith.constant 0 : i32
    %c0_i32_1 = arith.constant 0 : i32
    return %arg0, %c0_i32, %c0_i32_0 : i32, i32, i32
  }
  func.func @transform_1(%arg0: i32) -> (i32, i32) {
    %c0_i32 = arith.constant 0 : i32
    %c0_i32_0 = arith.constant 0 : i32
    %c0_i32_1 = arith.constant 0 : i32
    return %c0_i32, %c0_i32_0 : i32, i32
  }
  func.func @transform_2(%arg0: i32) -> (i32, i32) {
    %c0_i32 = arith.constant 0 : i32
    %c0_i32_0 = arith.constant 0 : i32
    %c0_i32_1 = arith.constant 0 : i32
    return %c0_i32, %c0_i32_0 : i32, i32
  }
  func.func @transform_3(%arg0: i32) -> (i32, i32) {
    %c0_i32 = arith.constant 0 : i32
    %c0_i32_0 = arith.constant 0 : i32
    %c0_i32_1 = arith.constant 0 : i32
    return %c0_i32, %c0_i32_0 : i32, i32
  }
  func.func @transform_4(%arg0: i32) -> (i32, i32) {
    %c0_i32 = arith.constant 0 : i32
    %c0_i32_0 = arith.constant 0 : i32
    %c0_i32_1 = arith.constant 0 : i32
    return %c0_i32, %c0_i32_0 : i32, i32
  }
  func.func @transform_5(%arg0: i32) -> (i32, i32) {
    %c0_i32 = arith.constant 0 : i32
    %c0_i32_0 = arith.constant 0 : i32
    %c0_i32_1 = arith.constant 0 : i32
    return %c0_i32, %c0_i32_0 : i32, i32
  }
  func.func @transform_6(%arg0: i32) -> (i32, i32) {
    %c0_i32 = arith.constant 0 : i32
    %c0_i32_0 = arith.constant 0 : i32
    %c0_i32_1 = arith.constant 0 : i32
    return %c0_i32, %c0_i32_0 : i32, i32
  }
  func.func @transform_7(%arg0: i32) -> (i32, i32) {
    %c0_i32 = arith.constant 0 : i32
    %c0_i32_0 = arith.constant 0 : i32
    %c0_i32_1 = arith.constant 0 : i32
    return %c0_i32, %c0_i32_0 : i32, i32
  }
  func.func @transform_8(%arg0: i32) -> (i32, i32) {
    %c0_i32 = arith.constant 0 : i32
    %c0_i32_0 = arith.constant 0 : i32
    %c0_i32_1 = arith.constant 0 : i32
    return %c0_i32, %c0_i32_0 : i32, i32
  }
  func.func @transform_9(%arg0: i32) -> (i32, i32) {
    %c0_i32 = arith.constant 0 : i32
    %c0_i32_0 = arith.constant 0 : i32
    %c0_i32_1 = arith.constant 0 : i32
    return %c0_i32, %c0_i32_0 : i32, i32
  }
  func.func @transform_10(%arg0: i32) -> (i32, i32) {
    %c0_i32 = arith.constant 0 : i32
    %c0_i32_0 = arith.constant 0 : i32
    %c0_i32_1 = arith.constant 0 : i32
    return %c0_i32, %c0_i32_0 : i32, i32
  }
  func.func @transform_11(%arg0: i32) -> (i32, i32) {
    %c0_i32 = arith.constant 0 : i32
    %c0_i32_0 = arith.constant 0 : i32
    %c0_i32_1 = arith.constant 0 : i32
    return %c0_i32, %c0_i32_0 : i32, i32
  }
  func.func @transform_12(%arg0: i32) -> (i32, i32) {
    %c0_i32 = arith.constant 0 : i32
    %c0_i32_0 = arith.constant 0 : i32
    %c0_i32_1 = arith.constant 0 : i32
    return %c0_i32, %c0_i32_0 : i32, i32
  }
  func.func @transform_13(%arg0: i32) -> (i32, i32) {
    %c0_i32 = arith.constant 0 : i32
    %c0_i32_0 = arith.constant 0 : i32
    %c0_i32_1 = arith.constant 0 : i32
    return %c0_i32, %c0_i32_0 : i32, i32
  }
  func.func @transform_14(%arg0: i32) -> (i32, i32) {
    %c0_i32 = arith.constant 0 : i32
    %c0_i32_0 = arith.constant 0 : i32
    %c0_i32_1 = arith.constant 0 : i32
    return %c0_i32, %c0_i32_0 : i32, i32
  }
  func.func @transform_15(%arg0: i32) -> (i32, i32, i32) {
    %c0_i32 = arith.constant 0 : i32
    %c0_i32_0 = arith.constant 0 : i32
    %c0_i32_1 = arith.constant 0 : i32
    %c0_i32_2 = arith.constant 0 : i32
    return %c0_i32, %c0_i32_0, %c0_i32_1 : i32, i32, i32
  }
  func.func @transform_16(%arg0: i32) -> (i32, i32) {
    %c0_i32 = arith.constant 0 : i32
    %c0_i32_0 = arith.constant 0 : i32
    %c0_i32_1 = arith.constant 0 : i32
    return %c0_i32, %c0_i32_0 : i32, i32
  }
  func.func @transform_17(%arg0: i32) -> (i32, i32) {
    %c0_i32 = arith.constant 0 : i32
    %c0_i32_0 = arith.constant 0 : i32
    return %arg0, %c0_i32 : i32, i32
  }
  func.func @transform_18(%arg0: i32) -> (i32, i32) {
    %c0_i32 = arith.constant 0 : i32
    %c0_i32_0 = arith.constant 0 : i32
    return %arg0, %c0_i32 : i32, i32
  }
}

module attributes {stable_mosaic.version = 11 : i64} {
  func.func @kernel(%arg0: i32, %arg1: memref<2x8x4xf32, #tpu.memory_space<vmem>>, %arg2: memref<4x64xf32, #tpu.memory_space<vmem>>, %arg3: memref<1x64xf32, #tpu.memory_space<vmem>>, %arg4: memref<64x32xf32, #tpu.memory_space<vmem>>, %arg5: memref<1x32xf32, #tpu.memory_space<vmem>>, %arg6: memref<32x32xf32, #tpu.memory_space<vmem>>, %arg7: memref<1x32xf32, #tpu.memory_space<vmem>>, %arg8: memref<32x32xf32, #tpu.memory_space<vmem>>, %arg9: memref<1x32xf32, #tpu.memory_space<vmem>>, %arg10: memref<32x64xf32, #tpu.memory_space<vmem>>, %arg11: memref<1x64xf32, #tpu.memory_space<vmem>>, %arg12: memref<64x32xf32, #tpu.memory_space<vmem>>, %arg13: memref<1x32xf32, #tpu.memory_space<vmem>>, %arg14: memref<32x32xf32, #tpu.memory_space<vmem>>, %arg15: memref<1x32xf32, #tpu.memory_space<vmem>>, %arg16: memref<1x1x32xf32, #tpu.memory_space<vmem>>, %arg17: memref<1x1xf32, #tpu.memory_space<vmem>>, %arg18: memref<2x256xf32, #tpu.memory_space<vmem>>, %arg19: memref<2x8xf32, #tpu.memory_space<vmem>>) attributes {dimension_semantics = [#tpu.dimension_semantics<parallel>], iteration_bounds = array<i64: 1>, scalar_prefetch = 0 : i64, scratch_operands = 0 : i64, tpu.core_type = #tpu.core_type<tc>, window_params = [{transform_indices = @transform_0, window_bounds = array<i64: 2, 8, 4>}, {pipeline_mode = #tpu.pipeline_mode<synchronous>, transform_indices = @transform_1, window_bounds = array<i64: 4, 64>}, {pipeline_mode = #tpu.pipeline_mode<synchronous>, transform_indices = @transform_2, window_bounds = array<i64: 1, 64>}, {pipeline_mode = #tpu.pipeline_mode<synchronous>, transform_indices = @transform_3, window_bounds = array<i64: 64, 32>}, {pipeline_mode = #tpu.pipeline_mode<synchronous>, transform_indices = @transform_4, window_bounds = array<i64: 1, 32>}, {pipeline_mode = #tpu.pipeline_mode<synchronous>, transform_indices = @transform_5, window_bounds = array<i64: 32, 32>}, {pipeline_mode = #tpu.pipeline_mode<synchronous>, transform_indices = @transform_6, window_bounds = array<i64: 1, 32>}, {pipeline_mode = #tpu.pipeline_mode<synchronous>, transform_indices = @transform_7, window_bounds = array<i64: 32, 32>}, {pipeline_mode = #tpu.pipeline_mode<synchronous>, transform_indices = @transform_8, window_bounds = array<i64: 1, 32>}, {pipeline_mode = #tpu.pipeline_mode<synchronous>, transform_indices = @transform_9, window_bounds = array<i64: 32, 64>}, {pipeline_mode = #tpu.pipeline_mode<synchronous>, transform_indices = @transform_10, window_bounds = array<i64: 1, 64>}, {pipeline_mode = #tpu.pipeline_mode<synchronous>, transform_indices = @transform_11, window_bounds = array<i64: 64, 32>}, {pipeline_mode = #tpu.pipeline_mode<synchronous>, transform_indices = @transform_12, window_bounds = array<i64: 1, 32>}, {pipeline_mode = #tpu.pipeline_mode<synchronous>, transform_indices = @transform_13, window_bounds = array<i64: 32, 32>}, {pipeline_mode = #tpu.pipeline_mode<synchronous>, transform_indices = @transform_14, window_bounds = array<i64: 1, 32>}, {pipeline_mode = #tpu.pipeline_mode<synchronous>, transform_indices = @transform_15, window_bounds = array<i64: 1, 1, 32>}, {pipeline_mode = #tpu.pipeline_mode<synchronous>, transform_indices = @transform_16, window_bounds = array<i64: 1, 1>}, {transform_indices = @transform_17, window_bounds = array<i64: 2, 256>}, {transform_indices = @transform_18, window_bounds = array<i64: 2, 8>}]} {
    %c0 = arith.constant 0 : index
    %c0_0 = arith.constant 0 : index
    %c0_1 = arith.constant 0 : index
    %0 = vector.load %arg1[%c0, %c0_0, %c0_1] : memref<2x8x4xf32, #tpu.memory_space<vmem>>, vector<2x8x4xf32>
    %1 = vector.shape_cast %0 : vector<2x8x4xf32> to vector<16x4xf32>
    %c0_2 = arith.constant 0 : index
    %c0_3 = arith.constant 0 : index
    %2 = vector.load %arg2[%c0_2, %c0_3] : memref<4x64xf32, #tpu.memory_space<vmem>>, vector<4x64xf32>
    %cst = arith.constant dense<0.000000e+00> : vector<16x64xf32>
    %3 = tpu.matmul %1, %2, %cst {dimension_numbers = #tpu.dot_dimension_numbers<[1], [0], [0], [1], [0, 0, 1, 1], [], []>} : vector<16x4xf32>, vector<4x64xf32>, vector<16x64xf32> -> vector<16x64xf32>
    %c0_4 = arith.constant 0 : index
    %c0_5 = arith.constant 0 : index
    %4 = vector.load %arg3[%c0_4, %c0_5] : memref<1x64xf32, #tpu.memory_space<vmem>>, vector<1x64xf32>
    %5 = vector.broadcast %4 : vector<1x64xf32> to vector<16x64xf32>
    %6 = arith.addf %3, %5 : vector<16x64xf32>
    %cst_6 = arith.constant 0.000000e+00 : f32
    %7 = vector.broadcast %cst_6 : f32 to vector<16x64xf32>
    %8 = arith.maximumf %6, %7 : vector<16x64xf32>
    %c0_7 = arith.constant 0 : index
    %c0_8 = arith.constant 0 : index
    %9 = vector.load %arg4[%c0_7, %c0_8] : memref<64x32xf32, #tpu.memory_space<vmem>>, vector<64x32xf32>
    %cst_9 = arith.constant dense<0.000000e+00> : vector<16x32xf32>
    %10 = tpu.matmul %8, %9, %cst_9 {dimension_numbers = #tpu.dot_dimension_numbers<[1], [0], [0], [1], [0, 0, 1, 1], [], []>} : vector<16x64xf32>, vector<64x32xf32>, vector<16x32xf32> -> vector<16x32xf32>
    %c0_10 = arith.constant 0 : index
    %c0_11 = arith.constant 0 : index
    %11 = vector.load %arg5[%c0_10, %c0_11] : memref<1x32xf32, #tpu.memory_space<vmem>>, vector<1x32xf32>
    %12 = vector.broadcast %11 : vector<1x32xf32> to vector<16x32xf32>
    %13 = arith.addf %10, %12 : vector<16x32xf32>
    %c0_12 = arith.constant 0 : index
    %c0_13 = arith.constant 0 : index
    %14 = vector.load %arg6[%c0_12, %c0_13] : memref<32x32xf32, #tpu.memory_space<vmem>>, vector<32x32xf32>
    %cst_14 = arith.constant dense<0.000000e+00> : vector<16x32xf32>
    %15 = tpu.matmul %13, %14, %cst_14 {dimension_numbers = #tpu.dot_dimension_numbers<[1], [0], [0], [1], [0, 0, 1, 1], [], []>} : vector<16x32xf32>, vector<32x32xf32>, vector<16x32xf32> -> vector<16x32xf32>
    %c0_15 = arith.constant 0 : index
    %c0_16 = arith.constant 0 : index
    %16 = vector.load %arg7[%c0_15, %c0_16] : memref<1x32xf32, #tpu.memory_space<vmem>>, vector<1x32xf32>
    %17 = vector.broadcast %16 : vector<1x32xf32> to vector<16x32xf32>
    %18 = arith.addf %15, %17 : vector<16x32xf32>
    %cst_17 = arith.constant 0.000000e+00 : f32
    %19 = vector.broadcast %cst_17 : f32 to vector<16x32xf32>
    %20 = arith.maximumf %18, %19 : vector<16x32xf32>
    %c0_18 = arith.constant 0 : index
    %c0_19 = arith.constant 0 : index
    %21 = vector.load %arg8[%c0_18, %c0_19] : memref<32x32xf32, #tpu.memory_space<vmem>>, vector<32x32xf32>
    %cst_20 = arith.constant dense<0.000000e+00> : vector<16x32xf32>
    %22 = tpu.matmul %20, %21, %cst_20 {dimension_numbers = #tpu.dot_dimension_numbers<[1], [0], [0], [1], [0, 0, 1, 1], [], []>} : vector<16x32xf32>, vector<32x32xf32>, vector<16x32xf32> -> vector<16x32xf32>
    %c0_21 = arith.constant 0 : index
    %c0_22 = arith.constant 0 : index
    %23 = vector.load %arg9[%c0_21, %c0_22] : memref<1x32xf32, #tpu.memory_space<vmem>>, vector<1x32xf32>
    %24 = vector.broadcast %23 : vector<1x32xf32> to vector<16x32xf32>
    %25 = arith.addf %22, %24 : vector<16x32xf32>
    %26 = vector.shape_cast %25 : vector<16x32xf32> to vector<2x8x32xf32>
    %cst_23 = arith.constant dense<0.000000e+00> : vector<2x32xf32>
    %27 = vector.multi_reduction <add>, %26, %cst_23 [1] : vector<2x8x32xf32> to vector<2x32xf32>
    %28 = vector.shape_cast %27 : vector<2x32xf32> to vector<2x1x32xf32>
    %29 = vector.broadcast %28 : vector<2x1x32xf32> to vector<2x8x32xf32>
    %30 = arith.subf %29, %26 : vector<2x8x32xf32>
    %31 = vector.shape_cast %30 : vector<2x8x32xf32> to vector<16x32xf32>
    %c0_24 = arith.constant 0 : index
    %c0_25 = arith.constant 0 : index
    %32 = vector.load %arg10[%c0_24, %c0_25] : memref<32x64xf32, #tpu.memory_space<vmem>>, vector<32x64xf32>
    %cst_26 = arith.constant dense<0.000000e+00> : vector<16x64xf32>
    %33 = tpu.matmul %31, %32, %cst_26 {dimension_numbers = #tpu.dot_dimension_numbers<[1], [0], [0], [1], [0, 0, 1, 1], [], []>} : vector<16x32xf32>, vector<32x64xf32>, vector<16x64xf32> -> vector<16x64xf32>
    %c0_27 = arith.constant 0 : index
    %c0_28 = arith.constant 0 : index
    %34 = vector.load %arg11[%c0_27, %c0_28] : memref<1x64xf32, #tpu.memory_space<vmem>>, vector<1x64xf32>
    %35 = vector.broadcast %34 : vector<1x64xf32> to vector<16x64xf32>
    %36 = arith.addf %33, %35 : vector<16x64xf32>
    %cst_29 = arith.constant 0.000000e+00 : f32
    %37 = vector.broadcast %cst_29 : f32 to vector<16x64xf32>
    %38 = arith.maximumf %36, %37 : vector<16x64xf32>
    %c0_30 = arith.constant 0 : index
    %c0_31 = arith.constant 0 : index
    %39 = vector.load %arg12[%c0_30, %c0_31] : memref<64x32xf32, #tpu.memory_space<vmem>>, vector<64x32xf32>
    %cst_32 = arith.constant dense<0.000000e+00> : vector<16x32xf32>
    %40 = tpu.matmul %38, %39, %cst_32 {dimension_numbers = #tpu.dot_dimension_numbers<[1], [0], [0], [1], [0, 0, 1, 1], [], []>} : vector<16x64xf32>, vector<64x32xf32>, vector<16x32xf32> -> vector<16x32xf32>
    %c0_33 = arith.constant 0 : index
    %c0_34 = arith.constant 0 : index
    %41 = vector.load %arg13[%c0_33, %c0_34] : memref<1x32xf32, #tpu.memory_space<vmem>>, vector<1x32xf32>
    %42 = vector.broadcast %41 : vector<1x32xf32> to vector<16x32xf32>
    %43 = arith.addf %40, %42 : vector<16x32xf32>
    %c0_35 = arith.constant 0 : index
    %c0_36 = arith.constant 0 : index
    %44 = vector.load %arg14[%c0_35, %c0_36] : memref<32x32xf32, #tpu.memory_space<vmem>>, vector<32x32xf32>
    %cst_37 = arith.constant dense<0.000000e+00> : vector<16x32xf32>
    %45 = tpu.matmul %43, %44, %cst_37 {dimension_numbers = #tpu.dot_dimension_numbers<[1], [0], [0], [1], [0, 0, 1, 1], [], []>} : vector<16x32xf32>, vector<32x32xf32>, vector<16x32xf32> -> vector<16x32xf32>
    %c0_38 = arith.constant 0 : index
    %c0_39 = arith.constant 0 : index
    %46 = vector.load %arg15[%c0_38, %c0_39] : memref<1x32xf32, #tpu.memory_space<vmem>>, vector<1x32xf32>
    %47 = vector.broadcast %46 : vector<1x32xf32> to vector<16x32xf32>
    %48 = arith.addf %45, %47 : vector<16x32xf32>
    %cst_40 = arith.constant 0.000000e+00 : f32
    %49 = vector.broadcast %cst_40 : f32 to vector<16x32xf32>
    %50 = arith.maximumf %48, %49 : vector<16x32xf32>
    %51 = vector.shape_cast %50 : vector<16x32xf32> to vector<2x8x32xf32>
    %c0_41 = arith.constant 0 : index
    %c0_42 = arith.constant 0 : index
    %c0_43 = arith.constant 0 : index
    %52 = vector.load %arg16[%c0_41, %c0_42, %c0_43] : memref<1x1x32xf32, #tpu.memory_space<vmem>>, vector<1x1x32xf32>
    %53 = vector.broadcast %52 : vector<1x1x32xf32> to vector<2x8x32xf32>
    %54 = arith.mulf %51, %53 : vector<2x8x32xf32>
    %cst_44 = arith.constant dense<0.000000e+00> : vector<2x8xf32>
    %55 = vector.multi_reduction <add>, %54, %cst_44 [2] : vector<2x8x32xf32> to vector<2x8xf32>
    %c0_45 = arith.constant 0 : index
    %c0_46 = arith.constant 0 : index
    %56 = vector.load %arg17[%c0_45, %c0_46] : memref<1x1xf32, #tpu.memory_space<vmem>>, vector<1x1xf32>
    %57 = vector.broadcast %56 : vector<1x1xf32> to vector<2x8xf32>
    %58 = arith.addf %55, %57 : vector<2x8xf32>
    %59 = vector.shape_cast %43 : vector<16x32xf32> to vector<2x256xf32>
    %c0_47 = arith.constant 0 : index
    %c0_48 = arith.constant 0 : index
    %60 = vector.load %arg18[%c0_47, %c0_48] : memref<2x256xf32, #tpu.memory_space<vmem>>, vector<2x256xf32>
    tpu.vector_store %arg18[%c0_47, %c0_48], %59 {strides = array<i32>} : memref<2x256xf32, #tpu.memory_space<vmem>>, vector<2x256xf32>,
    %c0_49 = arith.constant 0 : index
    %c0_50 = arith.constant 0 : index
    %61 = vector.load %arg19[%c0_49, %c0_50] : memref<2x8xf32, #tpu.memory_space<vmem>>, vector<2x8xf32>
    tpu.vector_store %arg19[%c0_49, %c0_50], %58 {strides = array<i32>} : memref<2x8xf32, #tpu.memory_space<vmem>>, vector<2x8xf32>,
    return
  }
  func.func @transform_0(%arg0: i32) -> (i32, i32, i32) {
    %c0_i32 = arith.constant 0 : i32
    %c0_i32_0 = arith.constant 0 : i32
    %c0_i32_1 = arith.constant 0 : i32
    return %arg0, %c0_i32, %c0_i32_0 : i32, i32, i32
  }
  func.func @transform_1(%arg0: i32) -> (i32, i32) {
    %c0_i32 = arith.constant 0 : i32
    %c0_i32_0 = arith.constant 0 : i32
    %c0_i32_1 = arith.constant 0 : i32
    return %c0_i32, %c0_i32_0 : i32, i32
  }
  func.func @transform_2(%arg0: i32) -> (i32, i32) {
    %c0_i32 = arith.constant 0 : i32
    %c0_i32_0 = arith.constant 0 : i32
    %c0_i32_1 = arith.constant 0 : i32
    return %c0_i32, %c0_i32_0 : i32, i32
  }
  func.func @transform_3(%arg0: i32) -> (i32, i32) {
    %c0_i32 = arith.constant 0 : i32
    %c0_i32_0 = arith.constant 0 : i32
    %c0_i32_1 = arith.constant 0 : i32
    return %c0_i32, %c0_i32_0 : i32, i32
  }
  func.func @transform_4(%arg0: i32) -> (i32, i32) {
    %c0_i32 = arith.constant 0 : i32
    %c0_i32_0 = arith.constant 0 : i32
    %c0_i32_1 = arith.constant 0 : i32
    return %c0_i32, %c0_i32_0 : i32, i32
  }
  func.func @transform_5(%arg0: i32) -> (i32, i32) {
    %c0_i32 = arith.constant 0 : i32
    %c0_i32_0 = arith.constant 0 : i32
    %c0_i32_1 = arith.constant 0 : i32
    return %c0_i32, %c0_i32_0 : i32, i32
  }
  func.func @transform_6(%arg0: i32) -> (i32, i32) {
    %c0_i32 = arith.constant 0 : i32
    %c0_i32_0 = arith.constant 0 : i32
    %c0_i32_1 = arith.constant 0 : i32
    return %c0_i32, %c0_i32_0 : i32, i32
  }
  func.func @transform_7(%arg0: i32) -> (i32, i32) {
    %c0_i32 = arith.constant 0 : i32
    %c0_i32_0 = arith.constant 0 : i32
    %c0_i32_1 = arith.constant 0 : i32
    return %c0_i32, %c0_i32_0 : i32, i32
  }
  func.func @transform_8(%arg0: i32) -> (i32, i32) {
    %c0_i32 = arith.constant 0 : i32
    %c0_i32_0 = arith.constant 0 : i32
    %c0_i32_1 = arith.constant 0 : i32
    return %c0_i32, %c0_i32_0 : i32, i32
  }
  func.func @transform_9(%arg0: i32) -> (i32, i32) {
    %c0_i32 = arith.constant 0 : i32
    %c0_i32_0 = arith.constant 0 : i32
    %c0_i32_1 = arith.constant 0 : i32
    return %c0_i32, %c0_i32_0 : i32, i32
  }
  func.func @transform_10(%arg0: i32) -> (i32, i32) {
    %c0_i32 = arith.constant 0 : i32
    %c0_i32_0 = arith.constant 0 : i32
    %c0_i32_1 = arith.constant 0 : i32
    return %c0_i32, %c0_i32_0 : i32, i32
  }
  func.func @transform_11(%arg0: i32) -> (i32, i32) {
    %c0_i32 = arith.constant 0 : i32
    %c0_i32_0 = arith.constant 0 : i32
    %c0_i32_1 = arith.constant 0 : i32
    return %c0_i32, %c0_i32_0 : i32, i32
  }
  func.func @transform_12(%arg0: i32) -> (i32, i32) {
    %c0_i32 = arith.constant 0 : i32
    %c0_i32_0 = arith.constant 0 : i32
    %c0_i32_1 = arith.constant 0 : i32
    return %c0_i32, %c0_i32_0 : i32, i32
  }
  func.func @transform_13(%arg0: i32) -> (i32, i32) {
    %c0_i32 = arith.constant 0 : i32
    %c0_i32_0 = arith.constant 0 : i32
    %c0_i32_1 = arith.constant 0 : i32
    return %c0_i32, %c0_i32_0 : i32, i32
  }
  func.func @transform_14(%arg0: i32) -> (i32, i32) {
    %c0_i32 = arith.constant 0 : i32
    %c0_i32_0 = arith.constant 0 : i32
    %c0_i32_1 = arith.constant 0 : i32
    return %c0_i32, %c0_i32_0 : i32, i32
  }
  func.func @transform_15(%arg0: i32) -> (i32, i32, i32) {
    %c0_i32 = arith.constant 0 : i32
    %c0_i32_0 = arith.constant 0 : i32
    %c0_i32_1 = arith.constant 0 : i32
    %c0_i32_2 = arith.constant 0 : i32
    return %c0_i32, %c0_i32_0, %c0_i32_1 : i32, i32, i32
  }
  func.func @transform_16(%arg0: i32) -> (i32, i32) {
    %c0_i32 = arith.constant 0 : i32
    %c0_i32_0 = arith.constant 0 : i32
    %c0_i32_1 = arith.constant 0 : i32
    return %c0_i32, %c0_i32_0 : i32, i32
  }
  func.func @transform_17(%arg0: i32) -> (i32, i32) {
    %c0_i32 = arith.constant 0 : i32
    %c0_i32_0 = arith.constant 0 : i32
    return %arg0, %c0_i32 : i32, i32
  }
  func.func @transform_18(%arg0: i32) -> (i32, i32) {
    %c0_i32 = arith.constant 0 : i32
    %c0_i32_0 = arith.constant 0 : i32
    return %arg0, %c0_i32 : i32, i32
  }
}

module attributes {stable_mosaic.version = 11 : i64} {
  func.func @kernel(%arg0: i32, %arg1: memref<2x8x4xf32, #tpu.memory_space<vmem>>, %arg2: memref<4x64xf32, #tpu.memory_space<vmem>>, %arg3: memref<1x64xf32, #tpu.memory_space<vmem>>, %arg4: memref<64x32xf32, #tpu.memory_space<vmem>>, %arg5: memref<1x32xf32, #tpu.memory_space<vmem>>, %arg6: memref<32x32xf32, #tpu.memory_space<vmem>>, %arg7: memref<1x32xf32, #tpu.memory_space<vmem>>, %arg8: memref<32x32xf32, #tpu.memory_space<vmem>>, %arg9: memref<1x32xf32, #tpu.memory_space<vmem>>, %arg10: memref<32x64xf32, #tpu.memory_space<vmem>>, %arg11: memref<1x64xf32, #tpu.memory_space<vmem>>, %arg12: memref<64x32xf32, #tpu.memory_space<vmem>>, %arg13: memref<1x32xf32, #tpu.memory_space<vmem>>, %arg14: memref<32x32xf32, #tpu.memory_space<vmem>>, %arg15: memref<1x32xf32, #tpu.memory_space<vmem>>, %arg16: memref<1x1x32xf32, #tpu.memory_space<vmem>>, %arg17: memref<1x1xf32, #tpu.memory_space<vmem>>, %arg18: memref<2x8x32xf32, #tpu.memory_space<vmem>>, %arg19: memref<2x8xf32, #tpu.memory_space<vmem>>) attributes {dimension_semantics = [#tpu.dimension_semantics<parallel>], iteration_bounds = array<i64: 1>, scalar_prefetch = 0 : i64, scratch_operands = 0 : i64, tpu.core_type = #tpu.core_type<tc>, window_params = [{transform_indices = @transform_0, window_bounds = array<i64: 2, 8, 4>}, {pipeline_mode = #tpu.pipeline_mode<synchronous>, transform_indices = @transform_1, window_bounds = array<i64: 4, 64>}, {pipeline_mode = #tpu.pipeline_mode<synchronous>, transform_indices = @transform_2, window_bounds = array<i64: 1, 64>}, {pipeline_mode = #tpu.pipeline_mode<synchronous>, transform_indices = @transform_3, window_bounds = array<i64: 64, 32>}, {pipeline_mode = #tpu.pipeline_mode<synchronous>, transform_indices = @transform_4, window_bounds = array<i64: 1, 32>}, {pipeline_mode = #tpu.pipeline_mode<synchronous>, transform_indices = @transform_5, window_bounds = array<i64: 32, 32>}, {pipeline_mode = #tpu.pipeline_mode<synchronous>, transform_indices = @transform_6, window_bounds = array<i64: 1, 32>}, {pipeline_mode = #tpu.pipeline_mode<synchronous>, transform_indices = @transform_7, window_bounds = array<i64: 32, 32>}, {pipeline_mode = #tpu.pipeline_mode<synchronous>, transform_indices = @transform_8, window_bounds = array<i64: 1, 32>}, {pipeline_mode = #tpu.pipeline_mode<synchronous>, transform_indices = @transform_9, window_bounds = array<i64: 32, 64>}, {pipeline_mode = #tpu.pipeline_mode<synchronous>, transform_indices = @transform_10, window_bounds = array<i64: 1, 64>}, {pipeline_mode = #tpu.pipeline_mode<synchronous>, transform_indices = @transform_11, window_bounds = array<i64: 64, 32>}, {pipeline_mode = #tpu.pipeline_mode<synchronous>, transform_indices = @transform_12, window_bounds = array<i64: 1, 32>}, {pipeline_mode = #tpu.pipeline_mode<synchronous>, transform_indices = @transform_13, window_bounds = array<i64: 32, 32>}, {pipeline_mode = #tpu.pipeline_mode<synchronous>, transform_indices = @transform_14, window_bounds = array<i64: 1, 32>}, {pipeline_mode = #tpu.pipeline_mode<synchronous>, transform_indices = @transform_15, window_bounds = array<i64: 1, 1, 32>}, {pipeline_mode = #tpu.pipeline_mode<synchronous>, transform_indices = @transform_16, window_bounds = array<i64: 1, 1>}, {transform_indices = @transform_17, window_bounds = array<i64: 2, 8, 32>}, {transform_indices = @transform_18, window_bounds = array<i64: 2, 8>}]} {
    %c0 = arith.constant 0 : index
    %c0_0 = arith.constant 0 : index
    %c0_1 = arith.constant 0 : index
    %0 = vector.load %arg1[%c0, %c0_0, %c0_1] : memref<2x8x4xf32, #tpu.memory_space<vmem>>, vector<2x8x4xf32>
    %1 = vector.shape_cast %0 : vector<2x8x4xf32> to vector<16x4xf32>
    %c0_2 = arith.constant 0 : index
    %c0_3 = arith.constant 0 : index
    %2 = vector.load %arg2[%c0_2, %c0_3] : memref<4x64xf32, #tpu.memory_space<vmem>>, vector<4x64xf32>
    %cst = arith.constant dense<0.000000e+00> : vector<16x64xf32>
    %3 = tpu.matmul %1, %2, %cst {dimension_numbers = #tpu.dot_dimension_numbers<[1], [0], [0], [1], [0, 0, 1, 1], [], []>} : vector<16x4xf32>, vector<4x64xf32>, vector<16x64xf32> -> vector<16x64xf32>
    %c0_4 = arith.constant 0 : index
    %c0_5 = arith.constant 0 : index
    %4 = vector.load %arg3[%c0_4, %c0_5] : memref<1x64xf32, #tpu.memory_space<vmem>>, vector<1x64xf32>
    %5 = vector.broadcast %4 : vector<1x64xf32> to vector<16x64xf32>
    %6 = arith.addf %3, %5 : vector<16x64xf32>
    %cst_6 = arith.constant 0.000000e+00 : f32
    %7 = vector.broadcast %cst_6 : f32 to vector<16x64xf32>
    %8 = arith.maximumf %6, %7 : vector<16x64xf32>
    %c0_7 = arith.constant 0 : index
    %c0_8 = arith.constant 0 : index
    %9 = vector.load %arg4[%c0_7, %c0_8] : memref<64x32xf32, #tpu.memory_space<vmem>>, vector<64x32xf32>
    %cst_9 = arith.constant dense<0.000000e+00> : vector<16x32xf32>
    %10 = tpu.matmul %8, %9, %cst_9 {dimension_numbers = #tpu.dot_dimension_numbers<[1], [0], [0], [1], [0, 0, 1, 1], [], []>} : vector<16x64xf32>, vector<64x32xf32>, vector<16x32xf32> -> vector<16x32xf32>
    %c0_10 = arith.constant 0 : index
    %c0_11 = arith.constant 0 : index
    %11 = vector.load %arg5[%c0_10, %c0_11] : memref<1x32xf32, #tpu.memory_space<vmem>>, vector<1x32xf32>
    %12 = vector.broadcast %11 : vector<1x32xf32> to vector<16x32xf32>
    %13 = arith.addf %10, %12 : vector<16x32xf32>
    %c0_12 = arith.constant 0 : index
    %c0_13 = arith.constant 0 : index
    %14 = vector.load %arg6[%c0_12, %c0_13] : memref<32x32xf32, #tpu.memory_space<vmem>>, vector<32x32xf32>
    %cst_14 = arith.constant dense<0.000000e+00> : vector<16x32xf32>
    %15 = tpu.matmul %13, %14, %cst_14 {dimension_numbers = #tpu.dot_dimension_numbers<[1], [0], [0], [1], [0, 0, 1, 1], [], []>} : vector<16x32xf32>, vector<32x32xf32>, vector<16x32xf32> -> vector<16x32xf32>
    %c0_15 = arith.constant 0 : index
    %c0_16 = arith.constant 0 : index
    %16 = vector.load %arg7[%c0_15, %c0_16] : memref<1x32xf32, #tpu.memory_space<vmem>>, vector<1x32xf32>
    %17 = vector.broadcast %16 : vector<1x32xf32> to vector<16x32xf32>
    %18 = arith.addf %15, %17 : vector<16x32xf32>
    %cst_17 = arith.constant 0.000000e+00 : f32
    %19 = vector.broadcast %cst_17 : f32 to vector<16x32xf32>
    %20 = arith.maximumf %18, %19 : vector<16x32xf32>
    %c0_18 = arith.constant 0 : index
    %c0_19 = arith.constant 0 : index
    %21 = vector.load %arg8[%c0_18, %c0_19] : memref<32x32xf32, #tpu.memory_space<vmem>>, vector<32x32xf32>
    %cst_20 = arith.constant dense<0.000000e+00> : vector<16x32xf32>
    %22 = tpu.matmul %20, %21, %cst_20 {dimension_numbers = #tpu.dot_dimension_numbers<[1], [0], [0], [1], [0, 0, 1, 1], [], []>} : vector<16x32xf32>, vector<32x32xf32>, vector<16x32xf32> -> vector<16x32xf32>
    %c0_21 = arith.constant 0 : index
    %c0_22 = arith.constant 0 : index
    %23 = vector.load %arg9[%c0_21, %c0_22] : memref<1x32xf32, #tpu.memory_space<vmem>>, vector<1x32xf32>
    %24 = vector.broadcast %23 : vector<1x32xf32> to vector<16x32xf32>
    %25 = arith.addf %22, %24 : vector<16x32xf32>
    %26 = vector.shape_cast %25 : vector<16x32xf32> to vector<2x8x32xf32>
    %cst_23 = arith.constant dense<0.000000e+00> : vector<2x32xf32>
    %27 = vector.multi_reduction <add>, %26, %cst_23 [1] : vector<2x8x32xf32> to vector<2x32xf32>
    %28 = vector.shape_cast %27 : vector<2x32xf32> to vector<2x1x32xf32>
    %29 = vector.broadcast %28 : vector<2x1x32xf32> to vector<2x8x32xf32>
    %30 = arith.subf %29, %26 : vector<2x8x32xf32>
    %31 = vector.shape_cast %30 : vector<2x8x32xf32> to vector<16x32xf32>
    %c0_24 = arith.constant 0 : index
    %c0_25 = arith.constant 0 : index
    %32 = vector.load %arg10[%c0_24, %c0_25] : memref<32x64xf32, #tpu.memory_space<vmem>>, vector<32x64xf32>
    %cst_26 = arith.constant dense<0.000000e+00> : vector<16x64xf32>
    %33 = tpu.matmul %31, %32, %cst_26 {dimension_numbers = #tpu.dot_dimension_numbers<[1], [0], [0], [1], [0, 0, 1, 1], [], []>} : vector<16x32xf32>, vector<32x64xf32>, vector<16x64xf32> -> vector<16x64xf32>
    %c0_27 = arith.constant 0 : index
    %c0_28 = arith.constant 0 : index
    %34 = vector.load %arg11[%c0_27, %c0_28] : memref<1x64xf32, #tpu.memory_space<vmem>>, vector<1x64xf32>
    %35 = vector.broadcast %34 : vector<1x64xf32> to vector<16x64xf32>
    %36 = arith.addf %33, %35 : vector<16x64xf32>
    %cst_29 = arith.constant 0.000000e+00 : f32
    %37 = vector.broadcast %cst_29 : f32 to vector<16x64xf32>
    %38 = arith.maximumf %36, %37 : vector<16x64xf32>
    %c0_30 = arith.constant 0 : index
    %c0_31 = arith.constant 0 : index
    %39 = vector.load %arg12[%c0_30, %c0_31] : memref<64x32xf32, #tpu.memory_space<vmem>>, vector<64x32xf32>
    %cst_32 = arith.constant dense<0.000000e+00> : vector<16x32xf32>
    %40 = tpu.matmul %38, %39, %cst_32 {dimension_numbers = #tpu.dot_dimension_numbers<[1], [0], [0], [1], [0, 0, 1, 1], [], []>} : vector<16x64xf32>, vector<64x32xf32>, vector<16x32xf32> -> vector<16x32xf32>
    %c0_33 = arith.constant 0 : index
    %c0_34 = arith.constant 0 : index
    %41 = vector.load %arg13[%c0_33, %c0_34] : memref<1x32xf32, #tpu.memory_space<vmem>>, vector<1x32xf32>
    %42 = vector.broadcast %41 : vector<1x32xf32> to vector<16x32xf32>
    %43 = arith.addf %40, %42 : vector<16x32xf32>
    %c0_35 = arith.constant 0 : index
    %c0_36 = arith.constant 0 : index
    %44 = vector.load %arg14[%c0_35, %c0_36] : memref<32x32xf32, #tpu.memory_space<vmem>>, vector<32x32xf32>
    %cst_37 = arith.constant dense<0.000000e+00> : vector<16x32xf32>
    %45 = tpu.matmul %43, %44, %cst_37 {dimension_numbers = #tpu.dot_dimension_numbers<[1], [0], [0], [1], [0, 0, 1, 1], [], []>} : vector<16x32xf32>, vector<32x32xf32>, vector<16x32xf32> -> vector<16x32xf32>
    %c0_38 = arith.constant 0 : index
    %c0_39 = arith.constant 0 : index
    %46 = vector.load %arg15[%c0_38, %c0_39] : memref<1x32xf32, #tpu.memory_space<vmem>>, vector<1x32xf32>
    %47 = vector.broadcast %46 : vector<1x32xf32> to vector<16x32xf32>
    %48 = arith.addf %45, %47 : vector<16x32xf32>
    %cst_40 = arith.constant 0.000000e+00 : f32
    %49 = vector.broadcast %cst_40 : f32 to vector<16x32xf32>
    %50 = arith.maximumf %48, %49 : vector<16x32xf32>
    %51 = vector.shape_cast %50 : vector<16x32xf32> to vector<2x8x32xf32>
    %c0_41 = arith.constant 0 : index
    %c0_42 = arith.constant 0 : index
    %c0_43 = arith.constant 0 : index
    %52 = vector.load %arg16[%c0_41, %c0_42, %c0_43] : memref<1x1x32xf32, #tpu.memory_space<vmem>>, vector<1x1x32xf32>
    %53 = vector.broadcast %52 : vector<1x1x32xf32> to vector<2x8x32xf32>
    %54 = arith.mulf %51, %53 : vector<2x8x32xf32>
    %cst_44 = arith.constant dense<0.000000e+00> : vector<2x8xf32>
    %55 = vector.multi_reduction <add>, %54, %cst_44 [2] : vector<2x8x32xf32> to vector<2x8xf32>
    %c0_45 = arith.constant 0 : index
    %c0_46 = arith.constant 0 : index
    %56 = vector.load %arg17[%c0_45, %c0_46] : memref<1x1xf32, #tpu.memory_space<vmem>>, vector<1x1xf32>
    %57 = vector.broadcast %56 : vector<1x1xf32> to vector<2x8xf32>
    %58 = arith.addf %55, %57 : vector<2x8xf32>
    %59 = vector.shape_cast %43 : vector<16x32xf32> to vector<2x8x32xf32>
    %c0_47 = arith.constant 0 : index
    %c0_48 = arith.constant 0 : index
    %c0_49 = arith.constant 0 : index
    %60 = vector.load %arg18[%c0_47, %c0_48, %c0_49] : memref<2x8x32xf32, #tpu.memory_space<vmem>>, vector<2x8x32xf32>
    tpu.vector_store %arg18[%c0_47, %c0_48, %c0_49], %59 {strides = array<i32>} : memref<2x8x32xf32, #tpu.memory_space<vmem>>, vector<2x8x32xf32>,
    %c0_50 = arith.constant 0 : index
    %c0_51 = arith.constant 0 : index
    %61 = vector.load %arg19[%c0_50, %c0_51] : memref<2x8xf32, #tpu.memory_space<vmem>>, vector<2x8xf32>
    tpu.vector_store %arg19[%c0_50, %c0_51], %58 {strides = array<i32>} : memref<2x8xf32, #tpu.memory_space<vmem>>, vector<2x8xf32>,
    return
  }
  func.func @transform_0(%arg0: i32) -> (i32, i32, i32) {
    %c0_i32 = arith.constant 0 : i32
    %c0_i32_0 = arith.constant 0 : i32
    %c0_i32_1 = arith.constant 0 : i32
    return %arg0, %c0_i32, %c0_i32_0 : i32, i32, i32
  }
  func.func @transform_1(%arg0: i32) -> (i32, i32) {
    %c0_i32 = arith.constant 0 : i32
    %c0_i32_0 = arith.constant 0 : i32
    %c0_i32_1 = arith.constant 0 : i32
    return %c0_i32, %c0_i32_0 : i32, i32
  }
  func.func @transform_2(%arg0: i32) -> (i32, i32) {
    %c0_i32 = arith.constant 0 : i32
    %c0_i32_0 = arith.constant 0 : i32
    %c0_i32_1 = arith.constant 0 : i32
    return %c0_i32, %c0_i32_0 : i32, i32
  }
  func.func @transform_3(%arg0: i32) -> (i32, i32) {
    %c0_i32 = arith.constant 0 : i32
    %c0_i32_0 = arith.constant 0 : i32
    %c0_i32_1 = arith.constant 0 : i32
    return %c0_i32, %c0_i32_0 : i32, i32
  }
  func.func @transform_4(%arg0: i32) -> (i32, i32) {
    %c0_i32 = arith.constant 0 : i32
    %c0_i32_0 = arith.constant 0 : i32
    %c0_i32_1 = arith.constant 0 : i32
    return %c0_i32, %c0_i32_0 : i32, i32
  }
  func.func @transform_5(%arg0: i32) -> (i32, i32) {
    %c0_i32 = arith.constant 0 : i32
    %c0_i32_0 = arith.constant 0 : i32
    %c0_i32_1 = arith.constant 0 : i32
    return %c0_i32, %c0_i32_0 : i32, i32
  }
  func.func @transform_6(%arg0: i32) -> (i32, i32) {
    %c0_i32 = arith.constant 0 : i32
    %c0_i32_0 = arith.constant 0 : i32
    %c0_i32_1 = arith.constant 0 : i32
    return %c0_i32, %c0_i32_0 : i32, i32
  }
  func.func @transform_7(%arg0: i32) -> (i32, i32) {
    %c0_i32 = arith.constant 0 : i32
    %c0_i32_0 = arith.constant 0 : i32
    %c0_i32_1 = arith.constant 0 : i32
    return %c0_i32, %c0_i32_0 : i32, i32
  }
  func.func @transform_8(%arg0: i32) -> (i32, i32) {
    %c0_i32 = arith.constant 0 : i32
    %c0_i32_0 = arith.constant 0 : i32
    %c0_i32_1 = arith.constant 0 : i32
    return %c0_i32, %c0_i32_0 : i32, i32
  }
  func.func @transform_9(%arg0: i32) -> (i32, i32) {
    %c0_i32 = arith.constant 0 : i32
    %c0_i32_0 = arith.constant 0 : i32
    %c0_i32_1 = arith.constant 0 : i32
    return %c0_i32, %c0_i32_0 : i32, i32
  }
  func.func @transform_10(%arg0: i32) -> (i32, i32) {
    %c0_i32 = arith.constant 0 : i32
    %c0_i32_0 = arith.constant 0 : i32
    %c0_i32_1 = arith.constant 0 : i32
    return %c0_i32, %c0_i32_0 : i32, i32
  }
  func.func @transform_11(%arg0: i32) -> (i32, i32) {
    %c0_i32 = arith.constant 0 : i32
    %c0_i32_0 = arith.constant 0 : i32
    %c0_i32_1 = arith.constant 0 : i32
    return %c0_i32, %c0_i32_0 : i32, i32
  }
  func.func @transform_12(%arg0: i32) -> (i32, i32) {
    %c0_i32 = arith.constant 0 : i32
    %c0_i32_0 = arith.constant 0 : i32
    %c0_i32_1 = arith.constant 0 : i32
    return %c0_i32, %c0_i32_0 : i32, i32
  }
  func.func @transform_13(%arg0: i32) -> (i32, i32) {
    %c0_i32 = arith.constant 0 : i32
    %c0_i32_0 = arith.constant 0 : i32
    %c0_i32_1 = arith.constant 0 : i32
    return %c0_i32, %c0_i32_0 : i32, i32
  }
  func.func @transform_14(%arg0: i32) -> (i32, i32) {
    %c0_i32 = arith.constant 0 : i32
    %c0_i32_0 = arith.constant 0 : i32
    %c0_i32_1 = arith.constant 0 : i32
    return %c0_i32, %c0_i32_0 : i32, i32
  }
  func.func @transform_15(%arg0: i32) -> (i32, i32, i32) {
    %c0_i32 = arith.constant 0 : i32
    %c0_i32_0 = arith.constant 0 : i32
    %c0_i32_1 = arith.constant 0 : i32
    %c0_i32_2 = arith.constant 0 : i32
    return %c0_i32, %c0_i32_0, %c0_i32_1 : i32, i32, i32
  }
  func.func @transform_16(%arg0: i32) -> (i32, i32) {
    %c0_i32 = arith.constant 0 : i32
    %c0_i32_0 = arith.constant 0 : i32
    %c0_i32_1 = arith.constant 0 : i32
    return %c0_i32, %c0_i32_0 : i32, i32
  }
  func.func @transform_17(%arg0: i32) -> (i32, i32, i32) {
    %c0_i32 = arith.constant 0 : i32
    %c0_i32_0 = arith.constant 0 : i32
    %c0_i32_1 = arith.constant 0 : i32
    return %arg0, %c0_i32, %c0_i32_0 : i32, i32, i32
  }
  func.func @transform_18(%arg0: i32) -> (i32, i32) {
    %c0_i32 = arith.constant 0 : i32
    %c0_i32_0 = arith.constant 0 : i32
    return %arg0, %c0_i32 : i32, i32
  }
}

module attributes {stable_mosaic.version = 11 : i64} {
  func.func @kernel(%arg0: i32, %arg1: memref<2x8x4xf32, #tpu.memory_space<vmem>>, %arg2: memref<4x64xf32, #tpu.memory_space<vmem>>, %arg3: memref<1x64xf32, #tpu.memory_space<vmem>>, %arg4: memref<64x32xf32, #tpu.memory_space<vmem>>, %arg5: memref<1x32xf32, #tpu.memory_space<vmem>>, %arg6: memref<32x32xf32, #tpu.memory_space<vmem>>, %arg7: memref<1x32xf32, #tpu.memory_space<vmem>>, %arg8: memref<32x32xf32, #tpu.memory_space<vmem>>, %arg9: memref<1x32xf32, #tpu.memory_space<vmem>>, %arg10: memref<32x64xf32, #tpu.memory_space<vmem>>, %arg11: memref<1x64xf32, #tpu.memory_space<vmem>>, %arg12: memref<64x32xf32, #tpu.memory_space<vmem>>, %arg13: memref<1x32xf32, #tpu.memory_space<vmem>>, %arg14: memref<32x32xf32, #tpu.memory_space<vmem>>, %arg15: memref<1x32xf32, #tpu.memory_space<vmem>>, %arg16: memref<1x1x32xf32, #tpu.memory_space<vmem>>, %arg17: memref<1x1xf32, #tpu.memory_space<vmem>>, %arg18: memref<2x8x32xf32, #tpu.memory_space<vmem>>, %arg19: memref<2x8xf32, #tpu.memory_space<vmem>>) attributes {dimension_semantics = [#tpu.dimension_semantics<parallel>], iteration_bounds = array<i64: 1>, scalar_prefetch = 0 : i64, scratch_operands = 0 : i64, tpu.core_type = #tpu.core_type<tc>, window_params = [{transform_indices = @transform_0, window_bounds = array<i64: 2, 8, 4>}, {pipeline_mode = #tpu.pipeline_mode<synchronous>, transform_indices = @transform_1, window_bounds = array<i64: 4, 64>}, {pipeline_mode = #tpu.pipeline_mode<synchronous>, transform_indices = @transform_2, window_bounds = array<i64: 1, 64>}, {pipeline_mode = #tpu.pipeline_mode<synchronous>, transform_indices = @transform_3, window_bounds = array<i64: 64, 32>}, {pipeline_mode = #tpu.pipeline_mode<synchronous>, transform_indices = @transform_4, window_bounds = array<i64: 1, 32>}, {pipeline_mode = #tpu.pipeline_mode<synchronous>, transform_indices = @transform_5, window_bounds = array<i64: 32, 32>}, {pipeline_mode = #tpu.pipeline_mode<synchronous>, transform_indices = @transform_6, window_bounds = array<i64: 1, 32>}, {pipeline_mode = #tpu.pipeline_mode<synchronous>, transform_indices = @transform_7, window_bounds = array<i64: 32, 32>}, {pipeline_mode = #tpu.pipeline_mode<synchronous>, transform_indices = @transform_8, window_bounds = array<i64: 1, 32>}, {pipeline_mode = #tpu.pipeline_mode<synchronous>, transform_indices = @transform_9, window_bounds = array<i64: 32, 64>}, {pipeline_mode = #tpu.pipeline_mode<synchronous>, transform_indices = @transform_10, window_bounds = array<i64: 1, 64>}, {pipeline_mode = #tpu.pipeline_mode<synchronous>, transform_indices = @transform_11, window_bounds = array<i64: 64, 32>}, {pipeline_mode = #tpu.pipeline_mode<synchronous>, transform_indices = @transform_12, window_bounds = array<i64: 1, 32>}, {pipeline_mode = #tpu.pipeline_mode<synchronous>, transform_indices = @transform_13, window_bounds = array<i64: 32, 32>}, {pipeline_mode = #tpu.pipeline_mode<synchronous>, transform_indices = @transform_14, window_bounds = array<i64: 1, 32>}, {pipeline_mode = #tpu.pipeline_mode<synchronous>, transform_indices = @transform_15, window_bounds = array<i64: 1, 1, 32>}, {pipeline_mode = #tpu.pipeline_mode<synchronous>, transform_indices = @transform_16, window_bounds = array<i64: 1, 1>}, {transform_indices = @transform_17, window_bounds = array<i64: 2, 8, 32>}, {transform_indices = @transform_18, window_bounds = array<i64: 2, 8>}]} {
    %c0 = arith.constant 0 : index
    %c0_0 = arith.constant 0 : index
    %c0_1 = arith.constant 0 : index
    %0 = vector.load %arg1[%c0, %c0_0, %c0_1] : memref<2x8x4xf32, #tpu.memory_space<vmem>>, vector<2x8x4xf32>
    %1 = vector.shape_cast %0 : vector<2x8x4xf32> to vector<16x4xf32>
    %c0_2 = arith.constant 0 : index
    %c0_3 = arith.constant 0 : index
    %2 = vector.load %arg2[%c0_2, %c0_3] : memref<4x64xf32, #tpu.memory_space<vmem>>, vector<4x64xf32>
    %cst = arith.constant dense<0.000000e+00> : vector<16x64xf32>
    %3 = tpu.matmul %1, %2, %cst {dimension_numbers = #tpu.dot_dimension_numbers<[1], [0], [0], [1], [0, 0, 1, 1], [], []>} : vector<16x4xf32>, vector<4x64xf32>, vector<16x64xf32> -> vector<16x64xf32>
    %c0_4 = arith.constant 0 : index
    %c0_5 = arith.constant 0 : index
    %4 = vector.load %arg3[%c0_4, %c0_5] : memref<1x64xf32, #tpu.memory_space<vmem>>, vector<1x64xf32>
    %5 = vector.broadcast %4 : vector<1x64xf32> to vector<16x64xf32>
    %6 = arith.addf %3, %5 : vector<16x64xf32>
    %cst_6 = arith.constant 0.000000e+00 : f32
    %7 = vector.broadcast %cst_6 : f32 to vector<16x64xf32>
    %8 = arith.maximumf %6, %7 : vector<16x64xf32>
    %c0_7 = arith.constant 0 : index
    %c0_8 = arith.constant 0 : index
    %9 = vector.load %arg4[%c0_7, %c0_8] : memref<64x32xf32, #tpu.memory_space<vmem>>, vector<64x32xf32>
    %cst_9 = arith.constant dense<0.000000e+00> : vector<16x32xf32>
    %10 = tpu.matmul %8, %9, %cst_9 {dimension_numbers = #tpu.dot_dimension_numbers<[1], [0], [0], [1], [0, 0, 1, 1], [], []>} : vector<16x64xf32>, vector<64x32xf32>, vector<16x32xf32> -> vector<16x32xf32>
    %c0_10 = arith.constant 0 : index
    %c0_11 = arith.constant 0 : index
    %11 = vector.load %arg5[%c0_10, %c0_11] : memref<1x32xf32, #tpu.memory_space<vmem>>, vector<1x32xf32>
    %12 = vector.broadcast %11 : vector<1x32xf32> to vector<16x32xf32>
    %13 = arith.addf %10, %12 : vector<16x32xf32>
    %c0_12 = arith.constant 0 : index
    %c0_13 = arith.constant 0 : index
    %14 = vector.load %arg6[%c0_12, %c0_13] : memref<32x32xf32, #tpu.memory_space<vmem>>, vector<32x32xf32>
    %cst_14 = arith.constant dense<0.000000e+00> : vector<16x32xf32>
    %15 = tpu.matmul %13, %14, %cst_14 {dimension_numbers = #tpu.dot_dimension_numbers<[1], [0], [0], [1], [0, 0, 1, 1], [], []>} : vector<16x32xf32>, vector<32x32xf32>, vector<16x32xf32> -> vector<16x32xf32>
    %c0_15 = arith.constant 0 : index
    %c0_16 = arith.constant 0 : index
    %16 = vector.load %arg7[%c0_15, %c0_16] : memref<1x32xf32, #tpu.memory_space<vmem>>, vector<1x32xf32>
    %17 = vector.broadcast %16 : vector<1x32xf32> to vector<16x32xf32>
    %18 = arith.addf %15, %17 : vector<16x32xf32>
    %cst_17 = arith.constant 0.000000e+00 : f32
    %19 = vector.broadcast %cst_17 : f32 to vector<16x32xf32>
    %20 = arith.maximumf %18, %19 : vector<16x32xf32>
    %c0_18 = arith.constant 0 : index
    %c0_19 = arith.constant 0 : index
    %21 = vector.load %arg8[%c0_18, %c0_19] : memref<32x32xf32, #tpu.memory_space<vmem>>, vector<32x32xf32>
    %cst_20 = arith.constant dense<0.000000e+00> : vector<16x32xf32>
    %22 = tpu.matmul %20, %21, %cst_20 {dimension_numbers = #tpu.dot_dimension_numbers<[1], [0], [0], [1], [0, 0, 1, 1], [], []>} : vector<16x32xf32>, vector<32x32xf32>, vector<16x32xf32> -> vector<16x32xf32>
    %c0_21 = arith.constant 0 : index
    %c0_22 = arith.constant 0 : index
    %23 = vector.load %arg9[%c0_21, %c0_22] : memref<1x32xf32, #tpu.memory_space<vmem>>, vector<1x32xf32>
    %24 = vector.broadcast %23 : vector<1x32xf32> to vector<16x32xf32>
    %25 = arith.addf %22, %24 : vector<16x32xf32>
    %26 = vector.shape_cast %25 : vector<16x32xf32> to vector<2x8x32xf32>
    %cst_23 = arith.constant dense<0.000000e+00> : vector<2x32xf32>
    %27 = vector.multi_reduction <add>, %26, %cst_23 [1] : vector<2x8x32xf32> to vector<2x32xf32>
    %28 = vector.shape_cast %27 : vector<2x32xf32> to vector<2x1x32xf32>
    %29 = vector.broadcast %28 : vector<2x1x32xf32> to vector<2x8x32xf32>
    %30 = arith.subf %29, %26 : vector<2x8x32xf32>
    %31 = vector.shape_cast %30 : vector<2x8x32xf32> to vector<16x32xf32>
    %c0_24 = arith.constant 0 : index
    %c0_25 = arith.constant 0 : index
    %32 = vector.load %arg10[%c0_24, %c0_25] : memref<32x64xf32, #tpu.memory_space<vmem>>, vector<32x64xf32>
    %cst_26 = arith.constant dense<0.000000e+00> : vector<16x64xf32>
    %33 = tpu.matmul %31, %32, %cst_26 {dimension_numbers = #tpu.dot_dimension_numbers<[1], [0], [0], [1], [0, 0, 1, 1], [], []>} : vector<16x32xf32>, vector<32x64xf32>, vector<16x64xf32> -> vector<16x64xf32>
    %c0_27 = arith.constant 0 : index
    %c0_28 = arith.constant 0 : index
    %34 = vector.load %arg11[%c0_27, %c0_28] : memref<1x64xf32, #tpu.memory_space<vmem>>, vector<1x64xf32>
    %35 = vector.broadcast %34 : vector<1x64xf32> to vector<16x64xf32>
    %36 = arith.addf %33, %35 : vector<16x64xf32>
    %cst_29 = arith.constant 0.000000e+00 : f32
    %37 = vector.broadcast %cst_29 : f32 to vector<16x64xf32>
    %38 = arith.maximumf %36, %37 : vector<16x64xf32>
    %c0_30 = arith.constant 0 : index
    %c0_31 = arith.constant 0 : index
    %39 = vector.load %arg12[%c0_30, %c0_31] : memref<64x32xf32, #tpu.memory_space<vmem>>, vector<64x32xf32>
    %cst_32 = arith.constant dense<0.000000e+00> : vector<16x32xf32>
    %40 = tpu.matmul %38, %39, %cst_32 {dimension_numbers = #tpu.dot_dimension_numbers<[1], [0], [0], [1], [0, 0, 1, 1], [], []>} : vector<16x64xf32>, vector<64x32xf32>, vector<16x32xf32> -> vector<16x32xf32>
    %c0_33 = arith.constant 0 : index
    %c0_34 = arith.constant 0 : index
    %41 = vector.load %arg13[%c0_33, %c0_34] : memref<1x32xf32, #tpu.memory_space<vmem>>, vector<1x32xf32>
    %42 = vector.broadcast %41 : vector<1x32xf32> to vector<16x32xf32>
    %43 = arith.addf %40, %42 : vector<16x32xf32>
    %c0_35 = arith.constant 0 : index
    %c0_36 = arith.constant 0 : index
    %44 = vector.load %arg14[%c0_35, %c0_36] : memref<32x32xf32, #tpu.memory_space<vmem>>, vector<32x32xf32>
    %cst_37 = arith.constant dense<0.000000e+00> : vector<16x32xf32>
    %45 = tpu.matmul %43, %44, %cst_37 {dimension_numbers = #tpu.dot_dimension_numbers<[1], [0], [0], [1], [0, 0, 1, 1], [], []>} : vector<16x32xf32>, vector<32x32xf32>, vector<16x32xf32> -> vector<16x32xf32>
    %c0_38 = arith.constant 0 : index
    %c0_39 = arith.constant 0 : index
    %46 = vector.load %arg15[%c0_38, %c0_39] : memref<1x32xf32, #tpu.memory_space<vmem>>, vector<1x32xf32>
    %47 = vector.broadcast %46 : vector<1x32xf32> to vector<16x32xf32>
    %48 = arith.addf %45, %47 : vector<16x32xf32>
    %cst_40 = arith.constant 0.000000e+00 : f32
    %49 = vector.broadcast %cst_40 : f32 to vector<16x32xf32>
    %50 = arith.maximumf %48, %49 : vector<16x32xf32>
    %51 = vector.shape_cast %50 : vector<16x32xf32> to vector<2x8x32xf32>
    %c0_41 = arith.constant 0 : index
    %c0_42 = arith.constant 0 : index
    %c0_43 = arith.constant 0 : index
    %52 = vector.load %arg16[%c0_41, %c0_42, %c0_43] : memref<1x1x32xf32, #tpu.memory_space<vmem>>, vector<1x1x32xf32>
    %53 = vector.broadcast %52 : vector<1x1x32xf32> to vector<2x8x32xf32>
    %54 = arith.mulf %51, %53 : vector<2x8x32xf32>
    %cst_44 = arith.constant dense<0.000000e+00> : vector<2x8xf32>
    %55 = vector.multi_reduction <add>, %54, %cst_44 [2] : vector<2x8x32xf32> to vector<2x8xf32>
    %c0_45 = arith.constant 0 : index
    %c0_46 = arith.constant 0 : index
    %56 = vector.load %arg17[%c0_45, %c0_46] : memref<1x1xf32, #tpu.memory_space<vmem>>, vector<1x1xf32>
    %57 = vector.broadcast %56 : vector<1x1xf32> to vector<2x8xf32>
    %58 = arith.addf %55, %57 : vector<2x8xf32>
    %59 = vector.shape_cast %43 : vector<16x32xf32> to vector<2x8x32xf32>
    %c0_47 = arith.constant 0 : index
    %c0_48 = arith.constant 0 : index
    %c0_49 = arith.constant 0 : index
    %60 = vector.load %arg18[%c0_47, %c0_48, %c0_49] : memref<2x8x32xf32, #tpu.memory_space<vmem>>, vector<2x8x32xf32>
    tpu.vector_store %arg18[%c0_47, %c0_48, %c0_49], %59 {strides = array<i32>} : memref<2x8x32xf32, #tpu.memory_space<vmem>>, vector<2x8x32xf32>,
    %c0_50 = arith.constant 0 : index
    %c0_51 = arith.constant 0 : index
    %61 = vector.load %arg19[%c0_50, %c0_51] : memref<2x8xf32, #tpu.memory_space<vmem>>, vector<2x8xf32>
    tpu.vector_store %arg19[%c0_50, %c0_51], %58 {strides = array<i32>} : memref<2x8xf32, #tpu.memory_space<vmem>>, vector<2x8xf32>,
    return
  }
  func.func @transform_0(%arg0: i32) -> (i32, i32, i32) {
    %c0_i32 = arith.constant 0 : i32
    %c0_i32_0 = arith.constant 0 : i32
    %c0_i32_1 = arith.constant 0 : i32
    return %arg0, %c0_i32, %c0_i32_0 : i32, i32, i32
  }
  func.func @transform_1(%arg0: i32) -> (i32, i32) {
    %c0_i32 = arith.constant 0 : i32
    %c0_i32_0 = arith.constant 0 : i32
    %c0_i32_1 = arith.constant 0 : i32
    return %c0_i32, %c0_i32_0 : i32, i32
  }
  func.func @transform_2(%arg0: i32) -> (i32, i32) {
    %c0_i32 = arith.constant 0 : i32
    %c0_i32_0 = arith.constant 0 : i32
    %c0_i32_1 = arith.constant 0 : i32
    return %c0_i32, %c0_i32_0 : i32, i32
  }
  func.func @transform_3(%arg0: i32) -> (i32, i32) {
    %c0_i32 = arith.constant 0 : i32
    %c0_i32_0 = arith.constant 0 : i32
    %c0_i32_1 = arith.constant 0 : i32
    return %c0_i32, %c0_i32_0 : i32, i32
  }
  func.func @transform_4(%arg0: i32) -> (i32, i32) {
    %c0_i32 = arith.constant 0 : i32
    %c0_i32_0 = arith.constant 0 : i32
    %c0_i32_1 = arith.constant 0 : i32
    return %c0_i32, %c0_i32_0 : i32, i32
  }
  func.func @transform_5(%arg0: i32) -> (i32, i32) {
    %c0_i32 = arith.constant 0 : i32
    %c0_i32_0 = arith.constant 0 : i32
    %c0_i32_1 = arith.constant 0 : i32
    return %c0_i32, %c0_i32_0 : i32, i32
  }
  func.func @transform_6(%arg0: i32) -> (i32, i32) {
    %c0_i32 = arith.constant 0 : i32
    %c0_i32_0 = arith.constant 0 : i32
    %c0_i32_1 = arith.constant 0 : i32
    return %c0_i32, %c0_i32_0 : i32, i32
  }
  func.func @transform_7(%arg0: i32) -> (i32, i32) {
    %c0_i32 = arith.constant 0 : i32
    %c0_i32_0 = arith.constant 0 : i32
    %c0_i32_1 = arith.constant 0 : i32
    return %c0_i32, %c0_i32_0 : i32, i32
  }
  func.func @transform_8(%arg0: i32) -> (i32, i32) {
    %c0_i32 = arith.constant 0 : i32
    %c0_i32_0 = arith.constant 0 : i32
    %c0_i32_1 = arith.constant 0 : i32
    return %c0_i32, %c0_i32_0 : i32, i32
  }
  func.func @transform_9(%arg0: i32) -> (i32, i32) {
    %c0_i32 = arith.constant 0 : i32
    %c0_i32_0 = arith.constant 0 : i32
    %c0_i32_1 = arith.constant 0 : i32
    return %c0_i32, %c0_i32_0 : i32, i32
  }
  func.func @transform_10(%arg0: i32) -> (i32, i32) {
    %c0_i32 = arith.constant 0 : i32
    %c0_i32_0 = arith.constant 0 : i32
    %c0_i32_1 = arith.constant 0 : i32
    return %c0_i32, %c0_i32_0 : i32, i32
  }
  func.func @transform_11(%arg0: i32) -> (i32, i32) {
    %c0_i32 = arith.constant 0 : i32
    %c0_i32_0 = arith.constant 0 : i32
    %c0_i32_1 = arith.constant 0 : i32
    return %c0_i32, %c0_i32_0 : i32, i32
  }
  func.func @transform_12(%arg0: i32) -> (i32, i32) {
    %c0_i32 = arith.constant 0 : i32
    %c0_i32_0 = arith.constant 0 : i32
    %c0_i32_1 = arith.constant 0 : i32
    return %c0_i32, %c0_i32_0 : i32, i32
  }
  func.func @transform_13(%arg0: i32) -> (i32, i32) {
    %c0_i32 = arith.constant 0 : i32
    %c0_i32_0 = arith.constant 0 : i32
    %c0_i32_1 = arith.constant 0 : i32
    return %c0_i32, %c0_i32_0 : i32, i32
  }
  func.func @transform_14(%arg0: i32) -> (i32, i32) {
    %c0_i32 = arith.constant 0 : i32
    %c0_i32_0 = arith.constant 0 : i32
    %c0_i32_1 = arith.constant 0 : i32
    return %c0_i32, %c0_i32_0 : i32, i32
  }
  func.func @transform_15(%arg0: i32) -> (i32, i32, i32) {
    %c0_i32 = arith.constant 0 : i32
    %c0_i32_0 = arith.constant 0 : i32
    %c0_i32_1 = arith.constant 0 : i32
    %c0_i32_2 = arith.constant 0 : i32
    return %c0_i32, %c0_i32_0, %c0_i32_1 : i32, i32, i32
  }
  func.func @transform_16(%arg0: i32) -> (i32, i32) {
    %c0_i32 = arith.constant 0 : i32
    %c0_i32_0 = arith.constant 0 : i32
    %c0_i32_1 = arith.constant 0 : i32
    return %c0_i32, %c0_i32_0 : i32, i32
  }
  func.func @transform_17(%arg0: i32) -> (i32, i32, i32) {
    %c0_i32 = arith.constant 0 : i32
    %c0_i32_0 = arith.constant 0 : i32
    %c0_i32_1 = arith.constant 0 : i32
    return %arg0, %c0_i32, %c0_i32_0 : i32, i32, i32
  }
  func.func @transform_18(%arg0: i32) -> (i32, i32) {
    %c0_i32 = arith.constant 0 : i32
    %c0_i32_0 = arith.constant 0 : i32
    return %arg0, %c0_i32 : i32, i32
  }
}

</mosaic_0001>

<bundles_post_ra>
// kernel: tpu_custom_call.1
= control target key start
LH: loop header
LB: loop body
LE: loop exit
PB: predicated region body
PF: predicated region fallthrough
CT: control target
= control target key end

     0   :  { %s1371_s0 = inlined_call_operand.vmem [shape: f32[2,8,4], index: 0, kind: input, shape index: {}]   ;;  %s1372_s1 = inlined_call_operand.vmem [shape: f32[4,64], index: 1, kind: input, shape index: {}]   ;;  %s1373_s2 = inlined_call_operand.vmem [shape: f32[1,64], index: 2, kind: input, shape index: {}]   ;;  %s1374_s3 = inlined_call_operand.vmem [shape: f32[64,32], index: 3, kind: input, shape index: {}]   ;;  %s1375_s4 = inlined_call_operand.vmem [shape: f32[1,32], index: 4, kind: input, shape index: {}]   ;;  %s1376_s5 = inlined_call_operand.vmem [shape: f32[32,32], index: 5, kind: input, shape index: {}]   ;;  %s1377_s6 = inlined_call_operand.vmem [shape: f32[1,32], index: 6, kind: input, shape index: {}]   ;;  %s1378_s7 = inlined_call_operand.vmem [shape: f32[32,32], index: 7, kind: input, shape index: {}]   ;;  %s1379_s8 = inlined_call_operand.vmem [shape: f32[1,32], index: 8, kind: input, shape index: {}]   ;;  %s1380_s9 = inlined_call_operand.vmem [shape: f32[32,64], index: 9, kind: input, shape index: {}]   ;;  %s1381_s10 = inlined_call_operand.vmem [shape: f32[1,64], index: 10, kind: input, shape index: {}]   ;;  %s1382_s11 = inlined_call_operand.vmem [shape: f32[64,32], index: 11, kind: input, shape index: {}]   ;;  %s1383_s12 = inlined_call_operand.vmem [shape: f32[1,32], index: 12, kind: input, shape index: {}]   ;;  %s1384_s13 = inlined_call_operand.vmem [shape: f32[32,32], index: 13, kind: input, shape index: {}]   ;;  %s1385_s14 = inlined_call_operand.vmem [shape: f32[1,32], index: 14, kind: input, shape index: {}]   ;;  %s1386_s15 = inlined_call_operand.vmem [shape: f32[1,1,32], index: 15, kind: input, shape index: {}]   ;;  %s1387_s16 = inlined_call_operand.<no memory space> [shape: f32[1,1], index: 16, kind: input, shape index: {}]   ;;  %s1388_s17 = inlined_call_operand.hbm [shape: f32[2,8,32], index: 17, kind: output, shape index: {0}]   ;;  %s1389_s18 = inlined_call_operand.hbm [shape: f32[2,8], index: 18, kind: output, shape index: {1}]  }
   0x1   :  { %1391 = sst [smem:[#allocation9_spill]] %s1371_s0  ;;  %v24_v0 = vstv %s1387_s16 }
   0x2   :  { %1392 = sst [smem:[#allocation10_spill]] %s1372_s1  ;;  %25 = vst [vmem:[#allocation2] sm:$0x1] %v24_v0 }
   0x3   :  { %1393 = sst [smem:[#allocation11_spill]] %s1373_s2 }
   0x4   :  { %26 = vsyncpa [#allocation4], 0  ;;  %s1394_s0 = sld [smem:[#allocation10_spill]]  ;;  %vm79_vm0 = vcmask 1043456   ;;  %s1395_s20 = sld [smem:[#allocation9_spill]]  ;;  %vm72_vm1 = vcmask 31744  }
   0x5   :  { %v160_v4 = vld [vmem:[%s1374_s3] sm:$0xff]  ;;  %v161_v5 = vld [vmem:[%s1374_s3 + $0x8] sm:$0xff]  ;;  %v162_v6 = vld [vmem:[%s1374_s3 + $0x10] sm:$0xff] }
   0x6   :  { %v978_v7 = vpack.c.bf16 %v161_v5, %v160_v4  ;;  %v163_v8 = vld [vmem:[%s1374_s3 + $0x18] sm:$0xff]  ;;  %v164_v10 = vld [vmem:[%s1374_s3 + $0x20] sm:$0xff]  ;;  %v165_v11 = vld [vmem:[%s1374_s3 + $0x28] sm:$0xff] }
   0x7   :  { %v982_v9 = vpack.c.bf16 %v163_v8, %v162_v6 }
   0xa   :  { %v64_v1 = vld [vmem:[%s1394_s0] sm:$0xf]  ;;  %v63_v3 = vld [vmem:[%s1395_s20 + $0x8] sm:$0xff] }
   0xb   :  { %v62_v2 = vld [vmem:[%s1395_s20] sm:$0xff]  ;;  %891 = vmatprep.subr.msk.mxu0 %vm79_vm0, %v64_v1 }
   0xc   :  { %893 = vmatprep.mubr.msk.f32.mxu0 %vm72_vm1, %v62_v2  ;;  %892 = vmatpush3.msk.msra.mxu0 %vm79_vm0, %v64_v1 }
   0xd   :  { %894 = vmatmul.mubr.msk.f32.vlgmr.msra.gmra.mrb[0].mxu0 %vm72_vm1, %v63_v3 }
   0xe   :  { %27 = vsyncpa [#allocation6], 0  ;;  %979 = vmatprep.subr.bf16.mxu1 %v978_v7  ;;  %v986_v12 = vpack.c.bf16 %v165_v11, %v164_v10  ;;  %v166_v13 = vld [vmem:[%s1374_s3 + $0x30] sm:$0xff]  ;;  %v167_v14 = vld [vmem:[%s1374_s3 + $0x38] sm:$0xff]  ;;  %s1396_s27 = sld [smem:[#allocation11_spill]]  ;;  %vm175_vm2 = vcmask 523264  }
   0xf   :  { %981 = vmatpush3.bf16.msra.mxu1 %v978_v7  ;;  %v990_v15 = vpack.c.bf16 %v167_v14, %v166_v13  ;;  %v257_v16 = vld [vmem:[%s1376_s5] sm:$0xff]  ;;  %v258_v17 = vld [vmem:[%s1376_s5 + $0x8] sm:$0xff]  ;;  %v259_v26 = vld [vmem:[%s1376_s5 + $0x10] sm:$0xff]  ;;  %vm268_vm3 = vcmask 261120  }
  0x10   :  { %983 = vmatprep.subr.bf16.mxu1 %v982_v9  ;;  %v994_v18 = vpack.c.bf16 %v258_v17, %v257_v16  ;;  %v260_v27 = vld [vmem:[%s1376_s5 + $0x18] sm:$0xff]  ;;  %v352_v29 = vld [vmem:[%s1378_s7] sm:$0xff]  ;;  %v353_v30 = vld [vmem:[%s1378_s7 + $0x8] sm:$0xff]  ;;  %s1098_s5 = smov [#allocation3]  }
  0x11   :  { %v998_v28 = vpack.c.bf16 %v260_v27, %v259_v26  ;;  %v1002_v31 = vpack.c.bf16 %v353_v30, %v352_v29  ;;  %v824_v32 = vld [vmem:[%s1375_s4] ss:$0 sm:$0xff]  ;;  %v354_v37 = vld [vmem:[%s1378_s7 + $0x10] sm:$0xff]  ;;  %v355_v38 = vld [vmem:[%s1378_s7 + $0x18] sm:$0xff] }
  0x12   :  { %995 = vmatprep.subr.bf16.mxu0 %v994_v18  ;;  %v1006_v39 = vpack.c.bf16 %v355_v38, %v354_v37  ;;  %v827_v40 = vld [vmem:[%s1377_s6] ss:$0 sm:$0xff]  ;;  %v461_v48 = vld [vmem:[%s1380_s9 + $0x8] sm:$0xff]  ;;  %v462_v50 = vld [vmem:[%s1380_s9 + $0x10] sm:$0xff] }
  0x13   :  { %985 = vmatpush3.bf16.msra.mxu1 %v982_v9  ;;  %997 = vmatpush3.bf16.msra.mxu0 %v994_v18  ;;  %v460_v47 = vld [vmem:[%s1380_s9] sm:$0xff]  ;;  %v463_v51 = vld [vmem:[%s1380_s9 + $0x18] sm:$0xff]  ;;  %v555_v54 = vld [vmem:[%s1382_s11 + $0x8] sm:$0xff] }
  0x14   :  { %987 = vmatprep.subr.bf16.mxu1 %v986_v12  ;;  %v820_v19 = vld [vmem:[%s1396_s27] ss:$0 sm:$0xff]  ;;  %999 = vmatprep.subr.bf16.mxu0 %v998_v28  ;;  %v1010_v49 = vpack.c.bf16 %v461_v48, %v460_v47  ;;  %v1014_v52 = vpack.c.bf16 %v463_v51, %v462_v50  ;;  %v556_v55 = vld [vmem:[%s1382_s11 + $0x10] sm:$0xff]  ;;  %v557_v57 = vld [vmem:[%s1382_s11 + $0x18] sm:$0xff] }
  0x15   :  { %v554_v53 = vld [vmem:[%s1382_s11] sm:$0xff]  ;;  %v1022_v58 = vpack.c.bf16 %v557_v57, %v556_v55  ;;  %v559_v60 = vld [vmem:[%s1382_s11 + $0x28] sm:$0xff] }
  0x16   :  { %v1018_v56 = vpack.c.bf16 %v555_v54, %v554_v53  ;;  %v558_v59 = vld [vmem:[%s1382_s11 + $0x20] sm:$0xff] }
  0x17   :  { %989 = vmatpush3.bf16.msra.mxu1 %v986_v12  ;;  %1001 = vmatpush3.bf16.msra.mxu0 %v998_v28  ;;  %v1026_v61 = vpack.c.bf16 %v559_v60, %v558_v59  ;;  %v830_v62 = vld [vmem:[%s1379_s8] ss:$0 sm:$0xff] }
  0x18   :  { %991 = vmatprep.subr.bf16.mxu1 %v990_v15  ;;  %1003 = vmatprep.subr.bf16.mxu0 %v1002_v31  ;;  %v842_v47 = vld [vmem:[%s1386_s15] ss:$0 sm:$0xff] }
  0x1b   :  { %993 = vmatpush3.bf16.msra.mxu1 %v990_v15 }
  0x1c   :  { %1011 = vmatprep.subr.bf16.mxu1 %v1010_v49 }
  0xe0   :  { %v895_v20 = vpop.f32.mrb[0].mxu0 }
  0xe1   :  { %v155_v21 = vadd.f32 %v895_v20, %v820_v19  ;;  %v149_v22 = vpop.f32.mrb[1].mxu0  ;;  %v561_v20 = vld [vmem:[%s1382_s11 + $0x38] sm:$0xff] }
  0xe2   :  { %v150_v23 = vadd.f32 %v820_v19, %v149_v22  ;;  %v560_v19 = vld [vmem:[%s1382_s11 + $0x30] sm:$0xff]  ;;  %v650_v22 = vld [vmem:[%s1384_s13] sm:$0xff] }
  0xe3   :  { %v159_v25 = vmax.f32 %v155_v21, 0.0  ;;  %v1030_v21 = vpack.c.bf16 %v561_v20, %v560_v19 }
  0xe4   :  { %v158_v24 = vmax.f32 %v150_v23, 0.0  ;;  %v651_v23 = vld [vmem:[%s1384_s13 + $0x8] sm:$0xff] }
  0xe6   :  { %912 = vmatprep.mubr.msk.f32.mxu1 %vm175_vm2, %v158_v24  ;;  %v1034_v24 = vpack.c.bf16 %v651_v23, %v650_v22 }
  0xe7   :  { %913 = vmatmul.mubr.msk.f32.vlgmr.msra.gmra.mrb[0].mxu1 %vm175_vm2, %v159_v25  ;;  %v833_v25 = vld [vmem:[%s1381_s10] ss:$0 sm:$0xff] }
  0xe8   :  { %1013 = vmatpush3.bf16.msra.mxu1 %v1010_v49 }
  0xe9   :  { %1015 = vmatprep.subr.bf16.mxu1 %v1014_v52 }
  0xec   :  { %1017 = vmatpush3.bf16.msra.mxu1 %v1014_v52 }
  0xed   :  { %1035 = vmatprep.subr.bf16.mxu1 %v1034_v24 }
 0x1ba   :  { %v914_v33 = vpop.f32.mrb[0].mxu1 }
 0x1bb   :  { %v248_v34 = vpop.f32.mrb[1].mxu1  ;;  %v254_v36 = vadd.f32 %v914_v33, %v824_v32  ;;  %v653_v33 = vld [vmem:[%s1384_s13 + $0x18] sm:$0xff] }
 0x1bc   :  { %v249_v35 = vadd.f32 %v824_v32, %v248_v34  ;;  %v652_v32 = vld [vmem:[%s1384_s13 + $0x10] sm:$0xff] }
 0x1bd   :  { %v1038_v34 = vpack.c.bf16 %v653_v33, %v652_v32 }
 0x1be   :  { %923 = vmatprep.mubr.msk.f32.mxu0 %vm268_vm3, %v249_v35  ;;  %v836_v35 = vld [vmem:[%s1383_s12] ss:$0 sm:$0xff] }
 0x1bf   :  { %924 = vmatmul.mubr.msk.f32.vlgmr.msra.gmra.mrb[2].mxu0 %vm268_vm3, %v254_v36 }
 0x1c0   :  { %1005 = vmatpush3.bf16.msra.mxu0 %v1002_v31 }
 0x1c1   :  { %1007 = vmatprep.subr.bf16.mxu0 %v1006_v39 }
 0x1c4   :  { %1009 = vmatpush3.bf16.msra.mxu0 %v1006_v39 }
 0x1c5   :  { %1019 = vmatprep.subr.bf16.mxu0 %v1018_v56 }
 0x292   :  { %v925_v41 = vpop.f32.mrb[2].mxu0 }
 0x293   :  { %v347_v42 = vadd.f32 %v925_v41, %v827_v40  ;;  %v341_v43 = vpop.f32.mrb[3].mxu0  ;;  %v1097_v41 = vmov 0  }
 0x294   :  { %v342_v44 = vadd.f32 %v827_v40, %v341_v43  ;;  %v843_v40 = vld [vmem:[#allocation2] ss:$0 sm:$0xff]  ;;  %1047 = vset.pattern.permute.xlu1 %v1097_v41  ;;  %1048 = vset.pattern.permute.xlu0 %v1097_v41 }
 0x295   :  { %v351_v46 = vmax.f32 %v347_v42, 0.0  ;;  %766 = vperm.xlu1 %1047, %v843_v40   ;;  %v839_v42 = vld [vmem:[%s1385_s14] ss:$0 sm:$0xff]  ;;  %s795_s14 = sshll.u32 %s1098_s5, 4  ;;  %s796_s14 = int_to_ptr.vmem [resolvable:$true] %s795_s14 }
 0x296   :  { %v350_v45 = vmax.f32 %v342_v44, 0.0  ;;  %s1049_s9 = scalar_lea.vmem %s796_s14, 256  ;;  %p1054_p1 = scmp.lt.s32.totalorder %s796_s14, %s796_s14 }
 0x297   :  { %p1050_p0 = scmp.ne.s32.totalorder %s796_s14, %s1049_s9  ;;  %p1055_p2 = scmp.lt.s32.totalorder %s1049_s9, %s1049_s9 }
 0x298   :  { %934 = vmatprep.mubr.msk.f32.mxu0 %vm268_vm3, %v350_v45 }
 0x299   :  { %935 = vmatmul.mubr.msk.f32.vlgmr.msra.gmra.mrb[4].mxu0 %vm268_vm3, %v351_v46  ;;  %p1056_p3 = por %p1055_p2, %p1054_p1 }
 0x29a   :  { %1021 = vmatpush3.bf16.msra.mxu0 %v1018_v56 }
 0x29b   :  { %1023 = vmatprep.subr.bf16.mxu0 %v1022_v58  ;;  %p1057_p4 = pnand %p1056_p3, %p1050_p0 }
 0x29e   :  { %1025 = vmatpush3.bf16.msra.mxu0 %v1022_v58 }
 0x29f   :  { %1027 = vmatprep.subr.bf16.mxu0 %v1026_v61 }
 0x2a2   :  { %1029 = vmatpush3.bf16.msra.mxu0 %v1026_v61 }
 0x2a3   :  { %1031 = vmatprep.subr.bf16.mxu0 %v1030_v21 }
 0x2a6   :  { %1033 = vmatpush3.bf16.msra.mxu0 %v1030_v21 }
 0x36c   :  { %v936_v63 = vpop.f32.mrb[4].mxu0 }
 0x36d   :  { %v441_v0 = vadd.f32 %v936_v63, %v830_v62  ;;  %v435_v1 = vpop.f32.mrb[5].mxu0 }
 0x36e   :  { %v436_v2 = vadd.f32 %v830_v62, %v435_v1 }
 0x36f   :  { %v451_v3 = vsel %vm268_vm3, %v441_v0, 0.0 }
 0x370   :  { %v452_v4 = vrot.slane %v451_v3, 4  ;;  %v444_v5 = vsel %vm268_vm3, %v436_v2, 0.0 }
 0x371   :  { %v445_v6 = vrot.slane %v444_v5, 4 }
 0x372   :  { %v453_v7 = vadd.f32 %v452_v4, %v451_v3 }
 0x373   :  { %v446_v8 = vadd.f32 %v445_v6, %v444_v5 }
 0x374   :  { %v454_v9 = vrot.slane %v453_v7, 2 }
 0x375   :  { %v447_v10 = vrot.slane %v446_v8, 2 }
 0x376   :  { %v455_v11 = vadd.f32 %v454_v9, %v453_v7 }
 0x377   :  { %v448_v12 = vadd.f32 %v447_v10, %v446_v8 }
 0x378   :  { %v456_v13 = vrot.slane %v455_v11, 1 }
 0x379   :  { %v449_v14 = vrot.slane %v448_v12, 1 }
 0x37a   :  { %v457_v15 = vadd.f32 %v456_v13, %v455_v11 }
 0x37b   :  { %v450_v16 = vadd.f32 %v449_v14, %v448_v12 }
 0x37c   :  { %v459_v18 = vsub.f32 %v457_v15, %v441_v0 }
 0x37d   :  { %v458_v17 = vsub.f32 %v450_v16, %v436_v2 }
 0x37f   :  { %945 = vmatprep.mubr.msk.f32.mxu1 %vm268_vm3, %v458_v17 }
 0x380   :  { %946 = vmatmul.mubr.msk.f32.vlgmr.msra.gmra.mrb[2].mxu1 %vm268_vm3, %v459_v18 }
 0x381   :  { %1037 = vmatpush3.bf16.msra.mxu1 %v1034_v24 }
 0x382   :  { %1039 = vmatprep.subr.bf16.mxu1 %v1038_v34 }
 0x385   :  { %1041 = vmatpush3.bf16.msra.mxu1 %v1038_v34 }
 0x453   :  { %v947_v26 = vpop.f32.mrb[2].mxu1 }
 0x454   :  { %v549_v27 = vadd.f32 %v947_v26, %v833_v25  ;;  %v543_v28 = vpop.f32.mrb[3].mxu1 }
 0x455   :  { %v544_v29 = vadd.f32 %v833_v25, %v543_v28 }
 0x456   :  { %v553_v31 = vmax.f32 %v549_v27, 0.0 }
 0x457   :  { %v552_v30 = vmax.f32 %v544_v29, 0.0 }
 0x459   :  { %964 = vmatprep.mubr.msk.f32.mxu0 %vm175_vm2, %v552_v30 }
 0x45a   :  { %965 = vmatmul.mubr.msk.f32.vlgmr.msra.gmra.mrb[6].mxu0 %vm175_vm2, %v553_v31 }
 0x52d   :  { %v966_v36 = vpop.f32.mrb[6].mxu0 }
 0x52e   :  { %v647_v37 = vadd.f32 %v966_v36, %v836_v35  ;;  %v641_v38 = vpop.f32.mrb[7].mxu0 }
 0x52f   :  { %v642_v39 = vadd.f32 %v836_v35, %v641_v38 }
 0x530   :  { %772 = vst.msk [vmem:[#allocation3 + $0x8] sm:$0xff] %vm268_vm3, %v647_v37 }
 0x531   :  { %771 = vst.msk [vmem:[#allocation3] sm:$0xff] %vm268_vm3, %v642_v39  ;;  %975 = vmatprep.mubr.msk.f32.mxu1 %vm268_vm3, %v642_v39 }
 0x532   :  { %976 = vmatmul.mubr.msk.f32.vlgmr.msra.gmra.mrb[4].mxu1 %vm268_vm3, %v647_v37 }
 0x605   :  { %v977_v43 = vpop.f32.mrb[4].mxu1 }
 0x606   :  { %v739_v44 = vadd.f32 %v977_v43, %v839_v42  ;;  %v733_v45 = vpop.f32.mrb[5].mxu1 }
 0x607   :  { %v734_v46 = vadd.f32 %v839_v42, %v733_v45 }
 0x608   :  { %v743_v48 = vmax.f32 %v739_v44, 0.0 }
 0x609   :  { %v742_v49 = vmax.f32 %v734_v46, 0.0 }
 0x60a   :  { %v752_v52 = vmul.f32 %v842_v47, %v743_v48 }
 0x60b   :  { %v751_v50 = vmul.f32 %v842_v47, %v742_v49 }
 0x60c   :  { %v756_v53 = vsel %vm268_vm3, %v752_v52, 0.0 }
 0x60d   :  { %v753_v51 = vsel %vm268_vm3, %v751_v50, 0.0 }
 0x60e   :  { %754 = vadd.xlane.f32.xlu0 %v753_v51 }
 0x612   :  { %757 = vadd.xlane.f32.xlu0 %v756_v53 }
 0x613   :  { %1060 = shalt.err (!%p1057_p4)
}
 0x614   :  { %s1061_s16 = scalar_lea.hbm %s1388_s17, 256 }
 0x615   :  { %p1062_p5 = scmp.ne.s32.totalorder %s1388_s17, %s1061_s16  ;;  %p1065_p6 = scmp.lt.u32.totalorder %s1061_s16, %s1388_s17 }
 0x617   :  { %p1067_p7 = pnand %p1065_p6, %p1062_p5 }
 0x619   :  { %1070 = shalt.err (!%p1067_p7)
}
 0x61a   :  { %s1099_s25 = smov 128   ;;  %s1100_s26 = smov 8   ;;  %v775_v54 = vlaneseq  ;;  %v767_v57 = vpop.permute.xlu1 %766  ;;  %vm785_vm4 = vcmask 1041409   ;;  %vm788_vm5 = vcmask 58368  }
 0x61b   :  { %801 = dma.vmem_to_hbm [thread:$0]  %s796_s14, 256, %s1388_s17, [#allocation4], %s1099_s25, %s1099_s25, %s1100_s26  }
 0x61c   :  { %v776_v55 = vand.u32 127, %v775_v54  ;;  %v778_v56 = vshrl.u32 %v775_v54, 7  ;;  %s1101_s6 = smov [#allocation5]  }
 0x61d   :  { %s808_s3 = sshll.u32 %s1101_s6, 4  ;;  %s809_s3 = int_to_ptr.vmem [resolvable:$true] %s808_s3 }
 0x61e   :  { %v779_v59 = vsub.s32 %v776_v55, %v778_v56  ;;  %s1071_s28 = scalar_lea.vmem %s809_s3, 32  ;;  %p1076_p9 = scmp.lt.s32.totalorder %s809_s3, %s809_s3 }
 0x61f   :  { %p1072_p8 = scmp.ne.s32.totalorder %s809_s3, %s1071_s28  ;;  %p1077_p10 = scmp.lt.s32.totalorder %s1071_s28, %s1071_s28 }
 0x621   :  { %p1078_p11 = por %p1077_p10, %p1076_p9 }
 0x623   :  { %p1079_p12 = pnand %p1078_p11, %p1072_p8 }
 0x69b   :  { %v755_v58 = vpop.xlane.xlu0 %754 }
 0x69c   :  { %v769_v60 = vadd.f32 %v767_v57, %v755_v58 }
 0x69e   :  { %v780_v63 = vrot.slane %v769_v60, %v779_v59 }
 0x69f   :  { %v758_v61 = vpop.xlane.xlu0 %757 }
 0x6a0   :  { %v770_v62 = vadd.f32 %v767_v57, %v758_v61 }
 0x6a2   :  { %v784_v0 = vrot.slane %v770_v62, %v779_v59 }
 0x6a4   :  { %v786_v1 = vsel %vm785_vm4, %v784_v0, %v780_v63 }
 0x6a5   :  { %789 = vst.msk [vmem:[#allocation5] sm:$0x3] %vm788_vm5, %v786_v1 }
 0x6a6   :  { %1082 = shalt.err (!%p1079_p12)
}
 0x6a7   :  { %s1083_s30 = scalar_lea.hbm %s1389_s18, 32 }
 0x6a8   :  { %p1084_p13 = scmp.ne.s32.totalorder %s1389_s18, %s1083_s30  ;;  %p1087_p0 = scmp.lt.u32.totalorder %s1083_s30, %s1389_s18 }
 0x6aa   :  { %p1089_p1 = pnand %p1087_p0, %p1084_p13 }
 0x6ac   :  { %1092 = shalt.err (!%p1089_p1)
}
 0x6ad   :  { %811 = dma.vmem_to_hbm [thread:$0]  %s809_s3, 32, %s1389_s18, [#allocation6]  }
 0x6ae   :  { %1093 = dma.done.wait [#allocation4], 256  }
 0x6af   :  { %1094 = vsyncadd [#allocation4], 4294967040 }
 0x6b0   :  { %1095 = dma.done.wait [#allocation6], 32  }
 0x6b1   :  { %1096 = vsyncadd [#allocation6], 4294967264 }
 0x6b2   :  { %818 = vsyncpa [#allocation4], 1 }
 0x6b3   :  { %819 = vsyncpa [#allocation6], 1 }

// kernel: tpu_custom_call.1
= control target key start
LH: loop header
LB: loop body
LE: loop exit
PB: predicated region body
PF: predicated region fallthrough
CT: control target
= control target key end

     0   :  { %s1371_s0 = inlined_call_operand.vmem [shape: f32[2,8,4], index: 0, kind: input, shape index: {}]   ;;  %s1372_s1 = inlined_call_operand.vmem [shape: f32[4,64], index: 1, kind: input, shape index: {}]   ;;  %s1373_s2 = inlined_call_operand.vmem [shape: f32[1,64], index: 2, kind: input, shape index: {}]   ;;  %s1374_s3 = inlined_call_operand.vmem [shape: f32[64,32], index: 3, kind: input, shape index: {}]   ;;  %s1375_s4 = inlined_call_operand.vmem [shape: f32[1,32], index: 4, kind: input, shape index: {}]   ;;  %s1376_s5 = inlined_call_operand.vmem [shape: f32[32,32], index: 5, kind: input, shape index: {}]   ;;  %s1377_s6 = inlined_call_operand.vmem [shape: f32[1,32], index: 6, kind: input, shape index: {}]   ;;  %s1378_s7 = inlined_call_operand.vmem [shape: f32[32,32], index: 7, kind: input, shape index: {}]   ;;  %s1379_s8 = inlined_call_operand.vmem [shape: f32[1,32], index: 8, kind: input, shape index: {}]   ;;  %s1380_s9 = inlined_call_operand.vmem [shape: f32[32,64], index: 9, kind: input, shape index: {}]   ;;  %s1381_s10 = inlined_call_operand.vmem [shape: f32[1,64], index: 10, kind: input, shape index: {}]   ;;  %s1382_s11 = inlined_call_operand.vmem [shape: f32[64,32], index: 11, kind: input, shape index: {}]   ;;  %s1383_s12 = inlined_call_operand.vmem [shape: f32[1,32], index: 12, kind: input, shape index: {}]   ;;  %s1384_s13 = inlined_call_operand.vmem [shape: f32[32,32], index: 13, kind: input, shape index: {}]   ;;  %s1385_s14 = inlined_call_operand.vmem [shape: f32[1,32], index: 14, kind: input, shape index: {}]   ;;  %s1386_s15 = inlined_call_operand.vmem [shape: f32[1,1,32], index: 15, kind: input, shape index: {}]   ;;  %s1387_s16 = inlined_call_operand.<no memory space> [shape: f32[1,1], index: 16, kind: input, shape index: {}]   ;;  %s1388_s17 = inlined_call_operand.hbm [shape: f32[2,8,32], index: 17, kind: output, shape index: {0}]   ;;  %s1389_s18 = inlined_call_operand.hbm [shape: f32[2,8], index: 18, kind: output, shape index: {1}]  }
   0x1   :  { %1391 = sst [smem:[#allocation9_spill]] %s1371_s0  ;;  %v24_v0 = vstv %s1387_s16 }
   0x2   :  { %1392 = sst [smem:[#allocation10_spill]] %s1372_s1  ;;  %25 = vst [vmem:[#allocation2] sm:$0x1] %v24_v0 }
   0x3   :  { %1393 = sst [smem:[#allocation11_spill]] %s1373_s2 }
   0x4   :  { %26 = vsyncpa [#allocation4], 0  ;;  %s1394_s0 = sld [smem:[#allocation10_spill]]  ;;  %vm79_vm0 = vcmask 1043456   ;;  %s1395_s20 = sld [smem:[#allocation9_spill]]  ;;  %vm72_vm1 = vcmask 31744  }
   0x5   :  { %v160_v4 = vld [vmem:[%s1374_s3] sm:$0xff]  ;;  %v161_v5 = vld [vmem:[%s1374_s3 + $0x8] sm:$0xff]  ;;  %v162_v6 = vld [vmem:[%s1374_s3 + $0x10] sm:$0xff] }
   0x6   :  { %v978_v7 = vpack.c.bf16 %v161_v5, %v160_v4  ;;  %v163_v8 = vld [vmem:[%s1374_s3 + $0x18] sm:$0xff]  ;;  %v164_v10 = vld [vmem:[%s1374_s3 + $0x20] sm:$0xff]  ;;  %v165_v11 = vld [vmem:[%s1374_s3 + $0x28] sm:$0xff] }
   0x7   :  { %v982_v9 = vpack.c.bf16 %v163_v8, %v162_v6 }
   0xa   :  { %v64_v1 = vld [vmem:[%s1394_s0] sm:$0xf]  ;;  %v63_v3 = vld [vmem:[%s1395_s20 + $0x8] sm:$0xff] }
   0xb   :  { %v62_v2 = vld [vmem:[%s1395_s20] sm:$0xff]  ;;  %891 = vmatprep.subr.msk.mxu0 %vm79_vm0, %v64_v1 }
   0xc   :  { %893 = vmatprep.mubr.msk.f32.mxu0 %vm72_vm1, %v62_v2  ;;  %892 = vmatpush3.msk.msra.mxu0 %vm79_vm0, %v64_v1 }
   0xd   :  { %894 = vmatmul.mubr.msk.f32.vlgmr.msra.gmra.mrb[0].mxu0 %vm72_vm1, %v63_v3 }
   0xe   :  { %27 = vsyncpa [#allocation6], 0  ;;  %979 = vmatprep.subr.bf16.mxu1 %v978_v7  ;;  %v986_v12 = vpack.c.bf16 %v165_v11, %v164_v10  ;;  %v166_v13 = vld [vmem:[%s1374_s3 + $0x30] sm:$0xff]  ;;  %v167_v14 = vld [vmem:[%s1374_s3 + $0x38] sm:$0xff]  ;;  %s1396_s27 = sld [smem:[#allocation11_spill]]  ;;  %vm175_vm2 = vcmask 523264  }
   0xf   :  { %981 = vmatpush3.bf16.msra.mxu1 %v978_v7  ;;  %v990_v15 = vpack.c.bf16 %v167_v14, %v166_v13  ;;  %v257_v16 = vld [vmem:[%s1376_s5] sm:$0xff]  ;;  %v258_v17 = vld [vmem:[%s1376_s5 + $0x8] sm:$0xff]  ;;  %v259_v26 = vld [vmem:[%s1376_s5 + $0x10] sm:$0xff]  ;;  %vm268_vm3 = vcmask 261120  }
  0x10   :  { %983 = vmatprep.subr.bf16.mxu1 %v982_v9  ;;  %v994_v18 = vpack.c.bf16 %v258_v17, %v257_v16  ;;  %v260_v27 = vld [vmem:[%s1376_s5 + $0x18] sm:$0xff]  ;;  %v352_v29 = vld [vmem:[%s1378_s7] sm:$0xff]  ;;  %v353_v30 = vld [vmem:[%s1378_s7 + $0x8] sm:$0xff]  ;;  %s1098_s5 = smov [#allocation3]  }
  0x11   :  { %v998_v28 = vpack.c.bf16 %v260_v27, %v259_v26  ;;  %v1002_v31 = vpack.c.bf16 %v353_v30, %v352_v29  ;;  %v824_v32 = vld [vmem:[%s1375_s4] ss:$0 sm:$0xff]  ;;  %v354_v37 = vld [vmem:[%s1378_s7 + $0x10] sm:$0xff]  ;;  %v355_v38 = vld [vmem:[%s1378_s7 + $0x18] sm:$0xff] }
  0x12   :  { %995 = vmatprep.subr.bf16.mxu0 %v994_v18  ;;  %v1006_v39 = vpack.c.bf16 %v355_v38, %v354_v37  ;;  %v827_v40 = vld [vmem:[%s1377_s6] ss:$0 sm:$0xff]  ;;  %v461_v48 = vld [vmem:[%s1380_s9 + $0x8] sm:$0xff]  ;;  %v462_v50 = vld [vmem:[%s1380_s9 + $0x10] sm:$0xff] }
  0x13   :  { %985 = vmatpush3.bf16.msra.mxu1 %v982_v9  ;;  %997 = vmatpush3.bf16.msra.mxu0 %v994_v18  ;;  %v460_v47 = vld [vmem:[%s1380_s9] sm:$0xff]  ;;  %v463_v51 = vld [vmem:[%s1380_s9 + $0x18] sm:$0xff]  ;;  %v555_v54 = vld [vmem:[%s1382_s11 + $0x8] sm:$0xff] }
  0x14   :  { %987 = vmatprep.subr.bf16.mxu1 %v986_v12  ;;  %v820_v19 = vld [vmem:[%s1396_s27] ss:$0 sm:$0xff]  ;;  %999 = vmatprep.subr.bf16.mxu0 %v998_v28  ;;  %v1010_v49 = vpack.c.bf16 %v461_v48, %v460_v47  ;;  %v1014_v52 = vpack.c.bf16 %v463_v51, %v462_v50  ;;  %v556_v55 = vld [vmem:[%s1382_s11 + $0x10] sm:$0xff]  ;;  %v557_v57 = vld [vmem:[%s1382_s11 + $0x18] sm:$0xff] }
  0x15   :  { %v554_v53 = vld [vmem:[%s1382_s11] sm:$0xff]  ;;  %v1022_v58 = vpack.c.bf16 %v557_v57, %v556_v55  ;;  %v559_v60 = vld [vmem:[%s1382_s11 + $0x28] sm:$0xff] }
  0x16   :  { %v1018_v56 = vpack.c.bf16 %v555_v54, %v554_v53  ;;  %v558_v59 = vld [vmem:[%s1382_s11 + $0x20] sm:$0xff] }
  0x17   :  { %989 = vmatpush3.bf16.msra.mxu1 %v986_v12  ;;  %1001 = vmatpush3.bf16.msra.mxu0 %v998_v28  ;;  %v1026_v61 = vpack.c.bf16 %v559_v60, %v558_v59  ;;  %v830_v62 = vld [vmem:[%s1379_s8] ss:$0 sm:$0xff] }
  0x18   :  { %991 = vmatprep.subr.bf16.mxu1 %v990_v15  ;;  %1003 = vmatprep.subr.bf16.mxu0 %v1002_v31  ;;  %v842_v47 = vld [vmem:[%s1386_s15] ss:$0 sm:$0xff] }
  0x1b   :  { %993 = vmatpush3.bf16.msra.mxu1 %v990_v15 }
  0x1c   :  { %1011 = vmatprep.subr.bf16.mxu1 %v1010_v49 }
  0xe0   :  { %v895_v20 = vpop.f32.mrb[0].mxu0 }
  0xe1   :  { %v155_v21 = vadd.f32 %v895_v20, %v820_v19  ;;  %v149_v22 = vpop.f32.mrb[1].mxu0  ;;  %v561_v20 = vld [vmem:[%s1382_s11 + $0x38] sm:$0xff] }
  0xe2   :  { %v150_v23 = vadd.f32 %v820_v19, %v149_v22  ;;  %v560_v19 = vld [vmem:[%s1382_s11 + $0x30] sm:$0xff]  ;;  %v650_v22 = vld [vmem:[%s1384_s13] sm:$0xff] }
  0xe3   :  { %v159_v25 = vmax.f32 %v155_v21, 0.0  ;;  %v1030_v21 = vpack.c.bf16 %v561_v20, %v560_v19 }
  0xe4   :  { %v158_v24 = vmax.f32 %v150_v23, 0.0  ;;  %v651_v23 = vld [vmem:[%s1384_s13 + $0x8] sm:$0xff] }
  0xe6   :  { %912 = vmatprep.mubr.msk.f32.mxu1 %vm175_vm2, %v158_v24  ;;  %v1034_v24 = vpack.c.bf16 %v651_v23, %v650_v22 }
  0xe7   :  { %913 = vmatmul.mubr.msk.f32.vlgmr.msra.gmra.mrb[0].mxu1 %vm175_vm2, %v159_v25  ;;  %v833_v25 = vld [vmem:[%s1381_s10] ss:$0 sm:$0xff] }
  0xe8   :  { %1013 = vmatpush3.bf16.msra.mxu1 %v1010_v49 }
  0xe9   :  { %1015 = vmatprep.subr.bf16.mxu1 %v1014_v52 }
  0xec   :  { %1017 = vmatpush3.bf16.msra.mxu1 %v1014_v52 }
  0xed   :  { %1035 = vmatprep.subr.bf16.mxu1 %v1034_v24 }
 0x1ba   :  { %v914_v33 = vpop.f32.mrb[0].mxu1 }
 0x1bb   :  { %v248_v34 = vpop.f32.mrb[1].mxu1  ;;  %v254_v36 = vadd.f32 %v914_v33, %v824_v32  ;;  %v653_v33 = vld [vmem:[%s1384_s13 + $0x18] sm:$0xff] }
 0x1bc   :  { %v249_v35 = vadd.f32 %v824_v32, %v248_v34  ;;  %v652_v32 = vld [vmem:[%s1384_s13 + $0x10] sm:$0xff] }
 0x1bd   :  { %v1038_v34 = vpack.c.bf16 %v653_v33, %v652_v32 }
 0x1be   :  { %923 = vmatprep.mubr.msk.f32.mxu0 %vm268_vm3, %v249_v35  ;;  %v836_v35 = vld [vmem:[%s1383_s12] ss:$0 sm:$0xff] }
 0x1bf   :  { %924 = vmatmul.mubr.msk.f32.vlgmr.msra.gmra.mrb[2].mxu0 %vm268_vm3, %v254_v36 }
 0x1c0   :  { %1005 = vmatpush3.bf16.msra.mxu0 %v1002_v31 }
 0x1c1   :  { %1007 = vmatprep.subr.bf16.mxu0 %v1006_v39 }
 0x1c4   :  { %1009 = vmatpush3.bf16.msra.mxu0 %v1006_v39 }
 0x1c5   :  { %1019 = vmatprep.subr.bf16.mxu0 %v1018_v56 }
 0x292   :  { %v925_v41 = vpop.f32.mrb[2].mxu0 }
 0x293   :  { %v347_v42 = vadd.f32 %v925_v41, %v827_v40  ;;  %v341_v43 = vpop.f32.mrb[3].mxu0  ;;  %v1097_v41 = vmov 0  }
 0x294   :  { %v342_v44 = vadd.f32 %v827_v40, %v341_v43  ;;  %v843_v40 = vld [vmem:[#allocation2] ss:$0 sm:$0xff]  ;;  %1047 = vset.pattern.permute.xlu1 %v1097_v41  ;;  %1048 = vset.pattern.permute.xlu0 %v1097_v41 }
 0x295   :  { %v351_v46 = vmax.f32 %v347_v42, 0.0  ;;  %766 = vperm.xlu1 %1047, %v843_v40   ;;  %v839_v42 = vld [vmem:[%s1385_s14] ss:$0 sm:$0xff]  ;;  %s795_s14 = sshll.u32 %s1098_s5, 4  ;;  %s796_s14 = int_to_ptr.vmem [resolvable:$true] %s795_s14 }
 0x296   :  { %v350_v45 = vmax.f32 %v342_v44, 0.0  ;;  %s1049_s9 = scalar_lea.vmem %s796_s14, 256  ;;  %p1054_p1 = scmp.lt.s32.totalorder %s796_s14, %s796_s14 }
 0x297   :  { %p1050_p0 = scmp.ne.s32.totalorder %s796_s14, %s1049_s9  ;;  %p1055_p2 = scmp.lt.s32.totalorder %s1049_s9, %s1049_s9 }
 0x298   :  { %934 = vmatprep.mubr.msk.f32.mxu0 %vm268_vm3, %v350_v45 }
 0x299   :  { %935 = vmatmul.mubr.msk.f32.vlgmr.msra.gmra.mrb[4].mxu0 %vm268_vm3, %v351_v46  ;;  %p1056_p3 = por %p1055_p2, %p1054_p1 }
 0x29a   :  { %1021 = vmatpush3.bf16.msra.mxu0 %v1018_v56 }
 0x29b   :  { %1023 = vmatprep.subr.bf16.mxu0 %v1022_v58  ;;  %p1057_p4 = pnand %p1056_p3, %p1050_p0 }
 0x29e   :  { %1025 = vmatpush3.bf16.msra.mxu0 %v1022_v58 }
 0x29f   :  { %1027 = vmatprep.subr.bf16.mxu0 %v1026_v61 }
 0x2a2   :  { %1029 = vmatpush3.bf16.msra.mxu0 %v1026_v61 }
 0x2a3   :  { %1031 = vmatprep.subr.bf16.mxu0 %v1030_v21 }
 0x2a6   :  { %1033 = vmatpush3.bf16.msra.mxu0 %v1030_v21 }
 0x36c   :  { %v936_v63 = vpop.f32.mrb[4].mxu0 }
 0x36d   :  { %v441_v0 = vadd.f32 %v936_v63, %v830_v62  ;;  %v435_v1 = vpop.f32.mrb[5].mxu0 }
 0x36e   :  { %v436_v2 = vadd.f32 %v830_v62, %v435_v1 }
 0x36f   :  { %v451_v3 = vsel %vm268_vm3, %v441_v0, 0.0 }
 0x370   :  { %v452_v4 = vrot.slane %v451_v3, 4  ;;  %v444_v5 = vsel %vm268_vm3, %v436_v2, 0.0 }
 0x371   :  { %v445_v6 = vrot.slane %v444_v5, 4 }
 0x372   :  { %v453_v7 = vadd.f32 %v452_v4, %v451_v3 }
 0x373   :  { %v446_v8 = vadd.f32 %v445_v6, %v444_v5 }
 0x374   :  { %v454_v9 = vrot.slane %v453_v7, 2 }
 0x375   :  { %v447_v10 = vrot.slane %v446_v8, 2 }
 0x376   :  { %v455_v11 = vadd.f32 %v454_v9, %v453_v7 }
 0x377   :  { %v448_v12 = vadd.f32 %v447_v10, %v446_v8 }
 0x378   :  { %v456_v13 = vrot.slane %v455_v11, 1 }
 0x379   :  { %v449_v14 = vrot.slane %v448_v12, 1 }
 0x37a   :  { %v457_v15 = vadd.f32 %v456_v13, %v455_v11 }
 0x37b   :  { %v450_v16 = vadd.f32 %v449_v14, %v448_v12 }
 0x37c   :  { %v459_v18 = vsub.f32 %v457_v15, %v441_v0 }
 0x37d   :  { %v458_v17 = vsub.f32 %v450_v16, %v436_v2 }
 0x37f   :  { %945 = vmatprep.mubr.msk.f32.mxu1 %vm268_vm3, %v458_v17 }
 0x380   :  { %946 = vmatmul.mubr.msk.f32.vlgmr.msra.gmra.mrb[2].mxu1 %vm268_vm3, %v459_v18 }
 0x381   :  { %1037 = vmatpush3.bf16.msra.mxu1 %v1034_v24 }
 0x382   :  { %1039 = vmatprep.subr.bf16.mxu1 %v1038_v34 }
 0x385   :  { %1041 = vmatpush3.bf16.msra.mxu1 %v1038_v34 }
 0x453   :  { %v947_v26 = vpop.f32.mrb[2].mxu1 }
 0x454   :  { %v549_v27 = vadd.f32 %v947_v26, %v833_v25  ;;  %v543_v28 = vpop.f32.mrb[3].mxu1 }
 0x455   :  { %v544_v29 = vadd.f32 %v833_v25, %v543_v28 }
 0x456   :  { %v553_v31 = vmax.f32 %v549_v27, 0.0 }
 0x457   :  { %v552_v30 = vmax.f32 %v544_v29, 0.0 }
 0x459   :  { %964 = vmatprep.mubr.msk.f32.mxu0 %vm175_vm2, %v552_v30 }
 0x45a   :  { %965 = vmatmul.mubr.msk.f32.vlgmr.msra.gmra.mrb[6].mxu0 %vm175_vm2, %v553_v31 }
 0x52d   :  { %v966_v36 = vpop.f32.mrb[6].mxu0 }
 0x52e   :  { %v647_v37 = vadd.f32 %v966_v36, %v836_v35  ;;  %v641_v38 = vpop.f32.mrb[7].mxu0 }
 0x52f   :  { %v642_v39 = vadd.f32 %v836_v35, %v641_v38 }
 0x530   :  { %772 = vst.msk [vmem:[#allocation3 + $0x8] sm:$0xff] %vm268_vm3, %v647_v37 }
 0x531   :  { %771 = vst.msk [vmem:[#allocation3] sm:$0xff] %vm268_vm3, %v642_v39  ;;  %975 = vmatprep.mubr.msk.f32.mxu1 %vm268_vm3, %v642_v39 }
 0x532   :  { %976 = vmatmul.mubr.msk.f32.vlgmr.msra.gmra.mrb[4].mxu1 %vm268_vm3, %v647_v37 }
 0x605   :  { %v977_v43 = vpop.f32.mrb[4].mxu1 }
 0x606   :  { %v739_v44 = vadd.f32 %v977_v43, %v839_v42  ;;  %v733_v45 = vpop.f32.mrb[5].mxu1 }
 0x607   :  { %v734_v46 = vadd.f32 %v839_v42, %v733_v45 }
 0x608   :  { %v743_v48 = vmax.f32 %v739_v44, 0.0 }
 0x609   :  { %v742_v49 = vmax.f32 %v734_v46, 0.0 }
 0x60a   :  { %v752_v52 = vmul.f32 %v842_v47, %v743_v48 }
 0x60b   :  { %v751_v50 = vmul.f32 %v842_v47, %v742_v49 }
 0x60c   :  { %v756_v53 = vsel %vm268_vm3, %v752_v52, 0.0 }
 0x60d   :  { %v753_v51 = vsel %vm268_vm3, %v751_v50, 0.0 }
 0x60e   :  { %754 = vadd.xlane.f32.xlu0 %v753_v51 }
 0x612   :  { %757 = vadd.xlane.f32.xlu0 %v756_v53 }
 0x613   :  { %1060 = shalt.err (!%p1057_p4)
}
 0x614   :  { %s1061_s16 = scalar_lea.hbm %s1388_s17, 256 }
 0x615   :  { %p1062_p5 = scmp.ne.s32.totalorder %s1388_s17, %s1061_s16  ;;  %p1065_p6 = scmp.lt.u32.totalorder %s1061_s16, %s1388_s17 }
 0x617   :  { %p1067_p7 = pnand %p1065_p6, %p1062_p5 }
 0x619   :  { %1070 = shalt.err (!%p1067_p7)
}
 0x61a   :  { %s1099_s25 = smov 128   ;;  %s1100_s26 = smov 8   ;;  %v775_v54 = vlaneseq  ;;  %v767_v57 = vpop.permute.xlu1 %766  ;;  %vm785_vm4 = vcmask 1041409   ;;  %vm788_vm5 = vcmask 58368  }
 0x61b   :  { %801 = dma.vmem_to_hbm [thread:$0]  %s796_s14, 256, %s1388_s17, [#allocation4], %s1099_s25, %s1099_s25, %s1100_s26  }
 0x61c   :  { %v776_v55 = vand.u32 127, %v775_v54  ;;  %v778_v56 = vshrl.u32 %v775_v54, 7  ;;  %s1101_s6 = smov [#allocation5]  }
 0x61d   :  { %s808_s3 = sshll.u32 %s1101_s6, 4  ;;  %s809_s3 = int_to_ptr.vmem [resolvable:$true] %s808_s3 }
 0x61e   :  { %v779_v59 = vsub.s32 %v776_v55, %v778_v56  ;;  %s1071_s28 = scalar_lea.vmem %s809_s3, 32  ;;  %p1076_p9 = scmp.lt.s32.totalorder %s809_s3, %s809_s3 }
 0x61f   :  { %p1072_p8 = scmp.ne.s32.totalorder %s809_s3, %s1071_s28  ;;  %p1077_p10 = scmp.lt.s32.totalorder %s1071_s28, %s1071_s28 }
 0x621   :  { %p1078_p11 = por %p1077_p10, %p1076_p9 }
 0x623   :  { %p1079_p12 = pnand %p1078_p11, %p1072_p8 }
 0x69b   :  { %v755_v58 = vpop.xlane.xlu0 %754 }
 0x69c   :  { %v769_v60 = vadd.f32 %v767_v57, %v755_v58 }
 0x69e   :  { %v780_v63 = vrot.slane %v769_v60, %v779_v59 }
 0x69f   :  { %v758_v61 = vpop.xlane.xlu0 %757 }
 0x6a0   :  { %v770_v62 = vadd.f32 %v767_v57, %v758_v61 }
 0x6a2   :  { %v784_v0 = vrot.slane %v770_v62, %v779_v59 }
 0x6a4   :  { %v786_v1 = vsel %vm785_vm4, %v784_v0, %v780_v63 }
 0x6a5   :  { %789 = vst.msk [vmem:[#allocation5] sm:$0x3] %vm788_vm5, %v786_v1 }
 0x6a6   :  { %1082 = shalt.err (!%p1079_p12)
}
 0x6a7   :  { %s1083_s30 = scalar_lea.hbm %s1389_s18, 32 }
 0x6a8   :  { %p1084_p13 = scmp.ne.s32.totalorder %s1389_s18, %s1083_s30  ;;  %p1087_p0 = scmp.lt.u32.totalorder %s1083_s30, %s1389_s18 }
 0x6aa   :  { %p1089_p1 = pnand %p1087_p0, %p1084_p13 }
 0x6ac   :  { %1092 = shalt.err (!%p1089_p1)
}
 0x6ad   :  { %811 = dma.vmem_to_hbm [thread:$0]  %s809_s3, 32, %s1389_s18, [#allocation6]  }
 0x6ae   :  { %1093 = dma.done.wait [#allocation4], 256  }
 0x6af   :  { %1094 = vsyncadd [#allocation4], 4294967040 }
 0x6b0   :  { %1095 = dma.done.wait [#allocation6], 32  }
 0x6b1   :  { %1096 = vsyncadd [#allocation6], 4294967264 }
 0x6b2   :  { %818 = vsyncpa [#allocation4], 1 }
 0x6b3   :  { %819 = vsyncpa [#allocation6], 1 }

</bundles_post_ra>
